<compile_context>
chip_gen: v7x
topology: tpu7x:2x2x1
jax: 0.10.0
libtpu: 0.0.40
codegen_flags: <defaults>
</compile_context>

<pallas_src>
import math

import numpy as np
import jax
import jax.numpy as jnp
from jax import lax
from jax.experimental import pallas as pl
from jax.experimental.pallas import tpu as pltpu

# ----------------------------- config (small, consistent with the module) ----
B            = 2
CVAE         = 4                       # vae_local.Cvae
VOCAB        = 64                      # vae_local.vocab_size  (self.V)
NUM_CLASSES  = 16
DEPTH        = 2
C            = 32                      # embed_dim (= D)
NUM_HEADS    = 2
HEAD_DIM     = C // NUM_HEADS
MLP_HIDDEN   = int(C * 4.0)            # mlp_ratio = 4.0
NORM_EPS     = 1e-6
COND_DROP    = 0.1
PATCH_NUMS   = [(1, 1), (2, 1), (3, 1)]            # (ph, pw), W=1
L            = sum(ph * pw for ph, pw in PATCH_NUMS)
FIRST_L      = PATCH_NUMS[0][0] * PATCH_NUMS[0][1]
BL           = B * L
ATTN_SCALE   = 0.25 / math.sqrt(HEAD_DIM)          # VAR: attn_l2_norm=False

# ----------------------------- packed-buffer layout ---------------------------
LANE       = 128
CVAE_PAD   = 8                                     # word_embed inner dim padded to 8

# act_pack lane offsets: each logical chunk starts at lane 0 of its own vreg tile
A_COND, A_XV, A_XBASE, A_NMASK, A_BIAS = 0, LANE, 2 * LANE, 3 * LANE, 4 * LANE
ACT_LANES  = 5 * LANE

# ada_pack: (C weight rows + bias row, 14*128): DEPTH*6 block chunks then 2 head
# chunks (scale, shift), each padded to 128 lanes.
N_ADA_CH   = 6 * DEPTH + 2
ADA_LANES  = N_ADA_CH * LANE
ADA_ROWS   = C + 8                                  # weight rows + bias row, sublane pad

def _rup8(n):
    return (n + 7) & ~7

# blk_pack row offsets (all multiples of 8 -> sublane-aligned slices in-kernel)
R_WQKV   = 0                                        # (C, 6*128) per-head q/k/v chunks
R_BQKV   = R_WQKV + C                               # (1, 6*128)
R_WPROJ  = _rup8(R_BQKV + 1)                        # (C, C), rows h*HEAD_DIM.. = head h
R_BPROJ  = R_WPROJ + C                              # (1, C)
R_WFC1   = _rup8(R_BPROJ + 1)                       # (C, MLP_HIDDEN)
R_BFC1   = R_WFC1 + C                               # (1, MLP_HIDDEN)
R_WFC2   = _rup8(R_BFC1 + 1)                        # (MLP_HIDDEN, C)
R_BFC2   = R_WFC2 + MLP_HIDDEN                      # (1, C)
BSTRIDE  = _rup8(R_BFC2 + 1)                        # rows per transformer block (256)
WE_OFF   = DEPTH * BSTRIDE                          # word_embed (CVAE_PAD, C)
R_BWE    = WE_OFF + CVAE_PAD                        # (1, C)
HEAD_OFF = _rup8(R_BWE + 1)                         # head weight (C, 128), VOCAB real
R_BHEAD  = HEAD_OFF + C                             # (1, 128)
BLK_ROWS = _rup8(R_BHEAD + 1)
BLK_LANES = 3 * NUM_HEADS * LANE                    # 768 (>= MLP_HIDDEN, >= LANE)


# ----------------------------- in-kernel helpers ------------------------------
def _ln(v, eps=NORM_EPS):
    # torch.nn.LayerNorm(elementwise_affine=False): biased variance
    mu = jnp.mean(v, axis=-1, keepdims=True)
    var = jnp.mean((v - mu) ** 2, axis=-1, keepdims=True)
    return (v - mu) * lax.rsqrt(var + eps)


# ----------------------------- the fused Pallas kernel ------------------------
def var_fwd_kernel(act_ref, ada_ref, blk_ref, o_ref):
    # ---- unpack activations (every chunk starts at lane 0 of a vreg tile) ----
    cond_raw = act_ref[:, A_COND:A_COND + C]            # (BL, C)  class embedding rows
    xv       = act_ref[:, A_XV:A_XV + CVAE_PAD]         # (BL, 8)  zero-padded Cvae input
    x_base   = act_ref[:, A_XBASE:A_XBASE + C]          # (BL, C)  sos/pos/lvl part of x
    notmask  = act_ref[:, A_NMASK:A_NMASK + C]          # (BL, C)  1.0 on word-embed rows
    bias     = act_ref[:, A_BIAS:A_BIAS + BL]           # (BL, BL) block-diag attn bias

    cond_rows = jax.nn.silu(cond_raw)                   # per-token SiLU(cond_BD)

    # ---- word_embed + residual-stream assembly (pure vreg math, no scratch) --
    we = jnp.dot(xv, blk_ref[WE_OFF:WE_OFF + CVAE_PAD, 0:C],
                 preferred_element_type=jnp.float32) + blk_ref[R_BWE:R_BWE + 1, 0:C]
    x = x_base + notmask * we                            # (BL, C) residual stream

    # ---- all AdaLN modulations (DEPTH blocks + head) in ONE hoisted matmul ---
    ada_all = jnp.dot(cond_rows, ada_ref[0:C, :],
                      preferred_element_type=jnp.float32) + ada_ref[C:C + 1, :]

    for d in range(DEPTH):                               # static unroll over blocks
        rb = d * BSTRIDE
        ab = d * 6 * LANE
        gamma1 = ada_all[:, ab + 0 * LANE: ab + 0 * LANE + C]
        gamma2 = ada_all[:, ab + 1 * LANE: ab + 1 * LANE + C]
        scale1 = ada_all[:, ab + 2 * LANE: ab + 2 * LANE + C]
        scale2 = ada_all[:, ab + 3 * LANE: ab + 3 * LANE + C]
        shift1 = ada_all[:, ab + 4 * LANE: ab + 4 * LANE + C]
        shift2 = ada_all[:, ab + 5 * LANE: ab + 5 * LANE + C]

        # ---- attention branch (Q scale folded into weights & bias) ----
        h1 = _ln(x) * (scale1 + 1.0) + shift1
        qkv = jnp.dot(h1, blk_ref[rb + R_WQKV: rb + R_WQKV + C, :],
                      preferred_element_type=jnp.float32) \
              + blk_ref[rb + R_BQKV: rb + R_BQKV + 1, :]           # (BL, 6*128)
        attn = jnp.zeros_like(x)
        for h in range(NUM_HEADS):                       # static unroll, H=2
            off = 3 * h * LANE
            qh = qkv[:, off:            off + HEAD_DIM]
            kh = qkv[:, off + LANE:     off + LANE + HEAD_DIM]
            vh = qkv[:, off + 2 * LANE: off + 2 * LANE + HEAD_DIM]
            s = lax.dot_general(qh, kh, (((1,), (1,)), ((), ())),
                                preferred_element_type=jnp.float32) + bias
            # max-subtraction dropped: scaled scores are tightly bounded and the
            # -1e5 / -1e30 masked entries underflow to exactly 0 either way.
            e = jnp.exp(s)
            p = e * pl.reciprocal(jnp.sum(e, axis=-1, keepdims=True), approx=True)
            oh = jnp.dot(p, vh, preferred_element_type=jnp.float32)
            attn = attn + jnp.dot(
                oh,
                blk_ref[rb + R_WPROJ + h * HEAD_DIM:
                        rb + R_WPROJ + (h + 1) * HEAD_DIM, 0:C],
                preferred_element_type=jnp.float32)
        attn = attn + blk_ref[rb + R_BPROJ: rb + R_BPROJ + 1, 0:C]
        x = x + attn * gamma1

        # ---- FFN branch (tanh GELU) ----
        h2 = _ln(x) * (scale2 + 1.0) + shift2
        h2 = jnp.dot(h2, blk_ref[rb + R_WFC1: rb + R_WFC1 + C, 0:MLP_HIDDEN],
                     preferred_element_type=jnp.float32) \
             + blk_ref[rb + R_BFC1: rb + R_BFC1 + 1, 0:MLP_HIDDEN]
        h2 = jax.nn.gelu(h2, approximate=True)
        h2 = jnp.dot(h2, blk_ref[rb + R_WFC2: rb + R_WFC2 + MLP_HIDDEN, 0:C],
                     preferred_element_type=jnp.float32) \
             + blk_ref[rb + R_BFC2: rb + R_BFC2 + 1, 0:C]
        x = x + h2 * gamma2

    # ---- AdaLNBeforeHead + head Linear(C, V), lane-padded to 128 outputs ----
    hb = DEPTH * 6 * LANE
    scale_h = ada_all[:, hb:        hb + C]
    shift_h = ada_all[:, hb + LANE: hb + LANE + C]
    hN = _ln(x) * (scale_h + 1.0) + shift_h
    o_ref[...] = jnp.dot(hN, blk_ref[HEAD_OFF: HEAD_OFF + C, 0:LANE],
                         preferred_element_type=jnp.float32) \
                 + blk_ref[R_BHEAD: R_BHEAD + 1, 0:LANE]


# ----------------------------- pallas_call wrapper -----------------------------
def run_var(act_pack, ada_pack, blk_pack):
    return pl.pallas_call(
        var_fwd_kernel,
        out_shape=jax.ShapeDtypeStruct((BL, LANE), jnp.float32),
        in_specs=[pl.BlockSpec(memory_space=pltpu.MemorySpace.VMEM)] * 3,
        out_specs=pl.BlockSpec(memory_space=pltpu.MemorySpace.VMEM),
    )(act_pack, ada_pack, blk_pack)


# ----------------------------- parameters ------------------------------------
def init_params(key):
    init_std = math.sqrt(1.0 / C / 3.0)
    ks = iter(jax.random.split(key, 32))

    def nrm(shape, std):
        return std * jax.random.normal(next(ks), shape, jnp.float32)

    return {
        "class_emb": nrm((NUM_CLASSES + 1, C), init_std),
        "pos_start": nrm((FIRST_L, C), init_std),
        "pos_1LC":   nrm((L, C), init_std),
        "lvl_emb":   nrm((len(PATCH_NUMS), C), init_std),
        "w_we":      nrm((CVAE, C), 0.02),           # word_embed, pre-transposed [in,out]
        "b_we":      nrm((C,), 0.02),
        "blocks": {
            "w_ada":  nrm((DEPTH, C, 6 * C), 0.02),
            "b_ada":  nrm((DEPTH, 6 * C), 0.02),
            "w_qkv":  nrm((DEPTH, C, 3 * C), 0.02),
            "b_qkv":  jnp.zeros((DEPTH, 3 * C), jnp.float32),  # q_bias/zero_k/v_bias
            "w_proj": nrm((DEPTH, C, C), 0.02),
            "b_proj": nrm((DEPTH, C), 0.02),
            "w_fc1":  nrm((DEPTH, C, MLP_HIDDEN), 0.02),
            "b_fc1":  nrm((DEPTH, MLP_HIDDEN), 0.02),
            "w_fc2":  nrm((DEPTH, MLP_HIDDEN, C), 0.02),
            "b_fc2":  nrm((DEPTH, C), 0.02),
        },
        "head": {
            "w_ada_head": nrm((C, 2 * C), 0.02),
            "b_ada_head": nrm((2 * C,), 0.02),
            "w_head":     nrm((C, VOCAB), 0.02),
            "b_head":     nrm((VOCAB,), 0.02),
        },
    }


# ----------------------------- weight packing (once, outside jit) --------------
def pack_params(params):
    blk, head = params["blocks"], params["head"]
    f = lambda a: np.asarray(a, np.float32)

    # ada_pack: all per-block AdaLN linears + head ada linear, 128-lane chunks
    ada = np.zeros((ADA_ROWS, ADA_LANES), np.float32)
    for d in range(DEPTH):
        w, b = f(blk["w_ada"][d]), f(blk["b_ada"][d])
        for j in range(6):                           # g1,g2,s1,s2,sh1,sh2
            ch = d * 6 + j
            ada[0:C, ch * LANE: ch * LANE + C] = w[:, j * C:(j + 1) * C]
            ada[C,   ch * LANE: ch * LANE + C] = b[j * C:(j + 1) * C]
    wh, bh = f(head["w_ada_head"]), f(head["b_ada_head"])
    for j in range(2):                               # head scale, shift
        ch = 6 * DEPTH + j
        ada[0:C, ch * LANE: ch * LANE + C] = wh[:, j * C:(j + 1) * C]
        ada[C,   ch * LANE: ch * LANE + C] = bh[j * C:(j + 1) * C]

    # blk_pack: qkv / proj / fc1 / fc2 / word_embed / head, sublane-aligned rows
    pk = np.zeros((BLK_ROWS, BLK_LANES), np.float32)
    for d in range(DEPTH):
        base = d * BSTRIDE
        wq, bq = f(blk["w_qkv"][d]), f(blk["b_qkv"][d])
        for h in range(NUM_HEADS):
            for t in range(3):                       # q, k, v
                src = t * C + h * HEAD_DIM
                lane = (3 * h + t) * LANE
                scale = ATTN_SCALE if t == 0 else 1.0   # fold Q scale into w AND b
                pk[base + R_WQKV: base + R_WQKV + C, lane: lane + HEAD_DIM] = \
                    wq[:, src: src + HEAD_DIM] * scale
                pk[base + R_BQKV, lane: lane + HEAD_DIM] = bq[src: src + HEAD_DIM] * scale
        pk[base + R_WPROJ: base + R_WPROJ + C, 0:C] = f(blk["w_proj"][d])
        pk[base + R_BPROJ, 0:C] = f(blk["b_proj"][d])
        pk[base + R_WFC1: base + R_WFC1 + C, 0:MLP_HIDDEN] = f(blk["w_fc1"][d])
        pk[base + R_BFC1, 0:MLP_HIDDEN] = f(blk["b_fc1"][d])
        pk[base + R_WFC2: base + R_WFC2 + MLP_HIDDEN, 0:C] = f(blk["w_fc2"][d])
        pk[base + R_BFC2, 0:C] = f(blk["b_fc2"][d])
    pk[WE_OFF: WE_OFF + CVAE, 0:C] = f(params["w_we"])     # rows CVAE..7 stay zero
    pk[R_BWE, 0:C] = f(params["b_we"])
    pk[HEAD_OFF: HEAD_OFF + C, 0:VOCAB] = f(head["w_head"])  # lanes VOCAB..127 zero
    pk[R_BHEAD, 0:VOCAB] = f(head["b_head"])
    return jnp.asarray(ada), jnp.asarray(pk)


# ----------------------------- constant tables (once, outside jit) -------------
def make_tables(params):
    lvl = np.concatenate([np.full(ph * pw, i, np.int32)
                          for i, (ph, pw) in enumerate(PATCH_NUMS)])
    mask_LL = np.where(lvl[:, None] >= lvl[None, :], 0.0, -100000.0).astype(np.float32)
    rb = np.arange(BL) // L
    same = rb[:, None] == rb[None, :]
    # per-batch mask on the block diagonal; cross-batch pairs fully masked so one
    # batched softmax == per-batch softmax exactly.
    bias_full = jnp.asarray(
        np.where(same, np.tile(mask_LL, (B, B)), -1e30).astype(np.float32))   # (BL, BL)

    addpos = params["lvl_emb"][jnp.asarray(lvl)] + params["pos_1LC"]           # (L, C)
    addmap = jnp.tile(addpos, (B, 1))                                          # (BL, C)
    row_in_seq = np.arange(BL) % L
    is_sos = row_in_seq < FIRST_L
    ps_rows = params["pos_start"][jnp.asarray(np.clip(row_in_seq, 0, FIRST_L - 1))]
    addmap = addmap + jnp.where(jnp.asarray(is_sos)[:, None], ps_rows, 0.0)    # + pos_start on sos rows
    sos_mask = jnp.asarray(is_sos.astype(np.float32))[:, None]                 # (BL, 1)
    notmask_bc = jnp.broadcast_to(1.0 - sos_mask, (BL, C))                     # (BL, C)
    return bias_full, addmap, sos_mask, notmask_bc


# ----------------------------- full forward ------------------------------------
@jax.jit
def var_forward(ada_pack, blk_pack, class_emb, bias_full, addmap, sos_mask, notmask_bc,
                label_B, x_BLCv_wo_first_l, drop_key):
    # label dropout (training-time CFG drop)
    # TODO(synk): torch.rand-based dropout replaced with jax PRNG (stochastic parity differs).
    drop = jax.random.uniform(drop_key, (B,)) < COND_DROP
    label = jnp.where(drop, NUM_CLASSES, label_B)
    cond_BD = class_emb[label]                                    # (B, C)
    cond_rows_raw = jnp.repeat(cond_BD, L, axis=0)                # (BL, C)

    xv = x_BLCv_wo_first_l.astype(jnp.float32)                    # (B, L-first_l, Cvae)
    xv_pad = jnp.pad(xv, ((0, 0), (FIRST_L, 0), (0, 0))).reshape(BL, CVAE)
    x_base = addmap + sos_mask * cond_rows_raw                    # (BL, C)

    def padc(a):                                                  # pad chunk to 128 lanes
        return jnp.pad(a, ((0, 0), (0, LANE - a.shape[1])))

    act_pack = jnp.concatenate(
        [padc(cond_rows_raw), padc(xv_pad), padc(x_base), padc(notmask_bc),
         padc(bias_full)], axis=1)                                # (BL, 5*128)

    logits = run_var(act_pack, ada_pack, blk_pack)                # (BL, 128)
    return logits[:, :VOCAB].reshape(B, L, VOCAB)


# ----------------------------- main ---------------------------------------------
if __name__ == "__main__":
    key = jax.random.PRNGKey(0)
    k_param, k_label, k_x, k_drop = jax.random.split(key, 4)

    params = init_params(k_param)
    ada_pack, blk_pack = pack_params(params)
    bias_full, addmap, sos_mask, notmask_bc = make_tables(params)

    label_B = jax.random.randint(k_label, (B,), 0, NUM_CLASSES, dtype=jnp.int32)
    x_BLCv_wo_first_l = jax.random.normal(k_x, (B, L - FIRST_L, CVAE), jnp.float32)

    logits = var_forward(ada_pack, blk_pack, params["class_emb"], bias_full, addmap,
                         sos_mask, notmask_bc, label_B, x_BLCv_wo_first_l, k_drop)
    logits = jax.block_until_ready(logits)

    assert logits.shape == (B, L, VOCAB), logits.shape
    assert logits.dtype == jnp.float32
    assert bool(jnp.all(jnp.isfinite(logits)))
    print("KERNEL_OK")
</pallas_src>

<mosaic_0001>
module attributes {stable_mosaic.version = 11 : i64} {
  func.func @var_fwd_kernel(%arg0: memref<12x640xf32, #tpu.memory_space<vmem>>, %arg1: memref<40x1792xf32, #tpu.memory_space<vmem>>, %arg2: memref<568x768xf32, #tpu.memory_space<vmem>>, %arg3: memref<12x128xf32, #tpu.memory_space<vmem>>) attributes {dimension_semantics = [], scalar_prefetch = 0 : i64, scratch_operands = 0 : i64, tpu.core_type = #tpu.core_type<tc>} {
    %c0 = arith.constant 0 : index
    %c0_0 = arith.constant 0 : index
    %0 = vector.load %arg0[%c0, %c0_0] : memref<12x640xf32, #tpu.memory_space<vmem>>, vector<12x32xf32>
    %c0_1 = arith.constant 0 : index
    %c128 = arith.constant 128 : index
    %1 = vector.load %arg0[%c0_1, %c128] : memref<12x640xf32, #tpu.memory_space<vmem>>, vector<12x8xf32>
    %c0_2 = arith.constant 0 : index
    %c256 = arith.constant 256 : index
    %2 = vector.load %arg0[%c0_2, %c256] : memref<12x640xf32, #tpu.memory_space<vmem>>, vector<12x32xf32>
    %c0_3 = arith.constant 0 : index
    %c384 = arith.constant 384 : index
    %3 = vector.load %arg0[%c0_3, %c384] : memref<12x640xf32, #tpu.memory_space<vmem>>, vector<12x32xf32>
    %c0_4 = arith.constant 0 : index
    %c512 = arith.constant 512 : index
    %4 = vector.load %arg0[%c0_4, %c512] : memref<12x640xf32, #tpu.memory_space<vmem>>, vector<12x12xf32>
    %5 = arith.negf %0 : vector<12x32xf32>
    %6 = math.exp %5 : vector<12x32xf32>
    %cst = arith.constant 1.000000e+00 : f32
    %7 = vector.broadcast %cst : f32 to vector<12x32xf32>
    %8 = arith.addf %7, %6 : vector<12x32xf32>
    %9 = arith.divf %7, %8 : vector<12x32xf32>
    %10 = arith.mulf %0, %9 : vector<12x32xf32>
    %c512_5 = arith.constant 512 : index
    %c0_6 = arith.constant 0 : index
    %11 = vector.load %arg2[%c512_5, %c0_6] : memref<568x768xf32, #tpu.memory_space<vmem>>, vector<8x32xf32>
    %cst_7 = arith.constant dense<0.000000e+00> : vector<12x32xf32>
    %12 = tpu.matmul %1, %11, %cst_7 {dimension_numbers = #tpu.dot_dimension_numbers<[1], [0], [0], [1], [0, 0, 1, 1], [], []>} : vector<12x8xf32>, vector<8x32xf32>, vector<12x32xf32> -> vector<12x32xf32>
    %c520 = arith.constant 520 : index
    %c0_8 = arith.constant 0 : index
    %13 = vector.load %arg2[%c520, %c0_8] : memref<568x768xf32, #tpu.memory_space<vmem>>, vector<1x32xf32>
    %14 = vector.broadcast %13 : vector<1x32xf32> to vector<12x32xf32>
    %15 = arith.addf %12, %14 : vector<12x32xf32>
    %16 = arith.mulf %3, %15 : vector<12x32xf32>
    %17 = arith.addf %2, %16 : vector<12x32xf32>
    %c0_9 = arith.constant 0 : index
    %c0_10 = arith.constant 0 : index
    %18 = vector.load %arg1[%c0_9, %c0_10] : memref<40x1792xf32, #tpu.memory_space<vmem>>, vector<32x1792xf32>
    %cst_11 = arith.constant dense<0.000000e+00> : vector<12x1792xf32>
    %19 = tpu.matmul %10, %18, %cst_11 {dimension_numbers = #tpu.dot_dimension_numbers<[1], [0], [0], [1], [0, 0, 1, 1], [], []>} : vector<12x32xf32>, vector<32x1792xf32>, vector<12x1792xf32> -> vector<12x1792xf32>
    %c32 = arith.constant 32 : index
    %c0_12 = arith.constant 0 : index
    %20 = vector.load %arg1[%c32, %c0_12] : memref<40x1792xf32, #tpu.memory_space<vmem>>, vector<1x1792xf32>
    %21 = vector.broadcast %20 : vector<1x1792xf32> to vector<12x1792xf32>
    %22 = arith.addf %19, %21 : vector<12x1792xf32>
    %23 = vector.extract_strided_slice %22 {offsets = [0, 0], sizes = [12, 32], strides = [1, 1]} : vector<12x1792xf32> to vector<12x32xf32>
    %24 = vector.extract_strided_slice %22 {offsets = [0, 128], sizes = [12, 32], strides = [1, 1]} : vector<12x1792xf32> to vector<12x32xf32>
    %25 = vector.extract_strided_slice %22 {offsets = [0, 256], sizes = [12, 32], strides = [1, 1]} : vector<12x1792xf32> to vector<12x32xf32>
    %26 = vector.extract_strided_slice %22 {offsets = [0, 384], sizes = [12, 32], strides = [1, 1]} : vector<12x1792xf32> to vector<12x32xf32>
    %27 = vector.extract_strided_slice %22 {offsets = [0, 512], sizes = [12, 32], strides = [1, 1]} : vector<12x1792xf32> to vector<12x32xf32>
    %28 = vector.extract_strided_slice %22 {offsets = [0, 640], sizes = [12, 32], strides = [1, 1]} : vector<12x1792xf32> to vector<12x32xf32>
    %cst_13 = arith.constant dense<0.000000e+00> : vector<12xf32>
    %29 = vector.multi_reduction <add>, %17, %cst_13 [1] : vector<12x32xf32> to vector<12xf32>
    %30 = vector.shape_cast %29 : vector<12xf32> to vector<12x1xf32>
    %cst_14 = arith.constant 3.200000e+01 : f32
    %31 = vector.broadcast %cst_14 : f32 to vector<12x1xf32>
    %32 = arith.divf %30, %31 : vector<12x1xf32>
    %33 = vector.broadcast %32 : vector<12x1xf32> to vector<12x32xf32>
    %34 = arith.subf %17, %33 : vector<12x32xf32>
    %35 = arith.mulf %34, %34 : vector<12x32xf32>
    %cst_15 = arith.constant dense<0.000000e+00> : vector<12xf32>
    %36 = vector.multi_reduction <add>, %35, %cst_15 [1] : vector<12x32xf32> to vector<12xf32>
    %37 = vector.shape_cast %36 : vector<12xf32> to vector<12x1xf32>
    %cst_16 = arith.constant 3.200000e+01 : f32
    %38 = vector.broadcast %cst_16 : f32 to vector<12x1xf32>
    %39 = arith.divf %37, %38 : vector<12x1xf32>
    %40 = vector.broadcast %32 : vector<12x1xf32> to vector<12x32xf32>
    %41 = arith.subf %17, %40 : vector<12x32xf32>
    %cst_17 = arith.constant 9.99999997E-7 : f32
    %42 = vector.broadcast %cst_17 : f32 to vector<12x1xf32>
    %43 = arith.addf %39, %42 : vector<12x1xf32>
    %44 = math.rsqrt %43 : vector<12x1xf32>
    %45 = vector.broadcast %44 : vector<12x1xf32> to vector<12x32xf32>
    %46 = arith.mulf %41, %45 : vector<12x32xf32>
    %cst_18 = arith.constant 1.000000e+00 : f32
    %47 = vector.broadcast %cst_18 : f32 to vector<12x32xf32>
    %48 = arith.addf %25, %47 : vector<12x32xf32>
    %49 = arith.mulf %46, %48 : vector<12x32xf32>
    %50 = arith.addf %49, %27 : vector<12x32xf32>
    %c0_19 = arith.constant 0 : index
    %c0_20 = arith.constant 0 : index
    %51 = vector.load %arg2[%c0_19, %c0_20] : memref<568x768xf32, #tpu.memory_space<vmem>>, vector<32x768xf32>
    %cst_21 = arith.constant dense<0.000000e+00> : vector<12x768xf32>
    %52 = tpu.matmul %50, %51, %cst_21 {dimension_numbers = #tpu.dot_dimension_numbers<[1], [0], [0], [1], [0, 0, 1, 1], [], []>} : vector<12x32xf32>, vector<32x768xf32>, vector<12x768xf32> -> vector<12x768xf32>
    %c32_22 = arith.constant 32 : index
    %c0_23 = arith.constant 0 : index
    %53 = vector.load %arg2[%c32_22, %c0_23] : memref<568x768xf32, #tpu.memory_space<vmem>>, vector<1x768xf32>
    %54 = vector.broadcast %53 : vector<1x768xf32> to vector<12x768xf32>
    %55 = arith.addf %52, %54 : vector<12x768xf32>
    %cst_24 = arith.constant 0.000000e+00 : f32
    %56 = vector.broadcast %cst_24 : f32 to vector<12x32xf32>
    %57 = vector.extract_strided_slice %55 {offsets = [0, 0], sizes = [12, 16], strides = [1, 1]} : vector<12x768xf32> to vector<12x16xf32>
    %58 = vector.extract_strided_slice %55 {offsets = [0, 128], sizes = [12, 16], strides = [1, 1]} : vector<12x768xf32> to vector<12x16xf32>
    %59 = vector.extract_strided_slice %55 {offsets = [0, 256], sizes = [12, 16], strides = [1, 1]} : vector<12x768xf32> to vector<12x16xf32>
    %cst_25 = arith.constant dense<0.000000e+00> : vector<12x12xf32>
    %60 = tpu.matmul %57, %58, %cst_25 {dimension_numbers = #tpu.dot_dimension_numbers<[1], [1], [0], [0], [0, 0, 1, 0], [], []>} : vector<12x16xf32>, vector<12x16xf32>, vector<12x12xf32> -> vector<12x12xf32>
    %61 = arith.addf %60, %4 : vector<12x12xf32>
    %62 = math.exp %61 : vector<12x12xf32>
    %cst_26 = arith.constant dense<0.000000e+00> : vector<12xf32>
    %63 = vector.multi_reduction <add>, %62, %cst_26 [1] : vector<12x12xf32> to vector<12xf32>
    %64 = vector.shape_cast %63 : vector<12xf32> to vector<12x1xf32>
    %65 = tpu.reciprocal %64 {approx = true} : vector<12x1xf32> -> vector<12x1xf32>
    %66 = vector.broadcast %65 : vector<12x1xf32> to vector<12x12xf32>
    %67 = arith.mulf %62, %66 : vector<12x12xf32>
    %cst_27 = arith.constant dense<0.000000e+00> : vector<12x16xf32>
    %68 = tpu.matmul %67, %59, %cst_27 {dimension_numbers = #tpu.dot_dimension_numbers<[1], [0], [0], [1], [0, 0, 1, 1], [], []>} : vector<12x12xf32>, vector<12x16xf32>, vector<12x16xf32> -> vector<12x16xf32>
    %c40 = arith.constant 40 : index
    %c0_28 = arith.constant 0 : index
    %69 = vector.load %arg2[%c40, %c0_28] : memref<568x768xf32, #tpu.memory_space<vmem>>, vector<16x32xf32>
    %cst_29 = arith.constant dense<0.000000e+00> : vector<12x32xf32>
    %70 = tpu.matmul %68, %69, %cst_29 {dimension_numbers = #tpu.dot_dimension_numbers<[1], [0], [0], [1], [0, 0, 1, 1], [], []>} : vector<12x16xf32>, vector<16x32xf32>, vector<12x32xf32> -> vector<12x32xf32>
    %71 = arith.addf %56, %70 : vector<12x32xf32>
    %72 = vector.extract_strided_slice %55 {offsets = [0, 384], sizes = [12, 16], strides = [1, 1]} : vector<12x768xf32> to vector<12x16xf32>
    %73 = vector.extract_strided_slice %55 {offsets = [0, 512], sizes = [12, 16], strides = [1, 1]} : vector<12x768xf32> to vector<12x16xf32>
    %74 = vector.extract_strided_slice %55 {offsets = [0, 640], sizes = [12, 16], strides = [1, 1]} : vector<12x768xf32> to vector<12x16xf32>
    %cst_30 = arith.constant dense<0.000000e+00> : vector<12x12xf32>
    %75 = tpu.matmul %72, %73, %cst_30 {dimension_numbers = #tpu.dot_dimension_numbers<[1], [1], [0], [0], [0, 0, 1, 0], [], []>} : vector<12x16xf32>, vector<12x16xf32>, vector<12x12xf32> -> vector<12x12xf32>
    %76 = arith.addf %75, %4 : vector<12x12xf32>
    %77 = math.exp %76 : vector<12x12xf32>
    %cst_31 = arith.constant dense<0.000000e+00> : vector<12xf32>
    %78 = vector.multi_reduction <add>, %77, %cst_31 [1] : vector<12x12xf32> to vector<12xf32>
    %79 = vector.shape_cast %78 : vector<12xf32> to vector<12x1xf32>
    %80 = tpu.reciprocal %79 {approx = true} : vector<12x1xf32> -> vector<12x1xf32>
    %81 = vector.broadcast %80 : vector<12x1xf32> to vector<12x12xf32>
    %82 = arith.mulf %77, %81 : vector<12x12xf32>
    %cst_32 = arith.constant dense<0.000000e+00> : vector<12x16xf32>
    %83 = tpu.matmul %82, %74, %cst_32 {dimension_numbers = #tpu.dot_dimension_numbers<[1], [0], [0], [1], [0, 0, 1, 1], [], []>} : vector<12x12xf32>, vector<12x16xf32>, vector<12x16xf32> -> vector<12x16xf32>
    %c56 = arith.constant 56 : index
    %c0_33 = arith.constant 0 : index
    %84 = vector.load %arg2[%c56, %c0_33] : memref<568x768xf32, #tpu.memory_space<vmem>>, vector<16x32xf32>
    %cst_34 = arith.constant dense<0.000000e+00> : vector<12x32xf32>
    %85 = tpu.matmul %83, %84, %cst_34 {dimension_numbers = #tpu.dot_dimension_numbers<[1], [0], [0], [1], [0, 0, 1, 1], [], []>} : vector<12x16xf32>, vector<16x32xf32>, vector<12x32xf32> -> vector<12x32xf32>
    %86 = arith.addf %71, %85 : vector<12x32xf32>
    %c72 = arith.constant 72 : index
    %c0_35 = arith.constant 0 : index
    %87 = vector.load %arg2[%c72, %c0_35] : memref<568x768xf32, #tpu.memory_space<vmem>>, vector<1x32xf32>
    %88 = vector.broadcast %87 : vector<1x32xf32> to vector<12x32xf32>
    %89 = arith.addf %86, %88 : vector<12x32xf32>
    %90 = arith.mulf %89, %23 : vector<12x32xf32>
    %91 = arith.addf %17, %90 : vector<12x32xf32>
    %cst_36 = arith.constant dense<0.000000e+00> : vector<12xf32>
    %92 = vector.multi_reduction <add>, %91, %cst_36 [1] : vector<12x32xf32> to vector<12xf32>
    %93 = vector.shape_cast %92 : vector<12xf32> to vector<12x1xf32>
    %cst_37 = arith.constant 3.200000e+01 : f32
    %94 = vector.broadcast %cst_37 : f32 to vector<12x1xf32>
    %95 = arith.divf %93, %94 : vector<12x1xf32>
    %96 = vector.broadcast %95 : vector<12x1xf32> to vector<12x32xf32>
    %97 = arith.subf %91, %96 : vector<12x32xf32>
    %98 = arith.mulf %97, %97 : vector<12x32xf32>
    %cst_38 = arith.constant dense<0.000000e+00> : vector<12xf32>
    %99 = vector.multi_reduction <add>, %98, %cst_38 [1] : vector<12x32xf32> to vector<12xf32>
    %100 = vector.shape_cast %99 : vector<12xf32> to vector<12x1xf32>
    %cst_39 = arith.constant 3.200000e+01 : f32
    %101 = vector.broadcast %cst_39 : f32 to vector<12x1xf32>
    %102 = arith.divf %100, %101 : vector<12x1xf32>
    %103 = vector.broadcast %95 : vector<12x1xf32> to vector<12x32xf32>
    %104 = arith.subf %91, %103 : vector<12x32xf32>
    %cst_40 = arith.constant 9.99999997E-7 : f32
    %105 = vector.broadcast %cst_40 : f32 to vector<12x1xf32>
    %106 = arith.addf %102, %105 : vector<12x1xf32>
    %107 = math.rsqrt %106 : vector<12x1xf32>
    %108 = vector.broadcast %107 : vector<12x1xf32> to vector<12x32xf32>
    %109 = arith.mulf %104, %108 : vector<12x32xf32>
    %cst_41 = arith.constant 1.000000e+00 : f32
    %110 = vector.broadcast %cst_41 : f32 to vector<12x32xf32>
    %111 = arith.addf %26, %110 : vector<12x32xf32>
    %112 = arith.mulf %109, %111 : vector<12x32xf32>
    %113 = arith.addf %112, %28 : vector<12x32xf32>
    %c80 = arith.constant 80 : index
    %c0_42 = arith.constant 0 : index
    %114 = vector.load %arg2[%c80, %c0_42] : memref<568x768xf32, #tpu.memory_space<vmem>>, vector<32x128xf32>
    %cst_43 = arith.constant dense<0.000000e+00> : vector<12x128xf32>
    %115 = tpu.matmul %113, %114, %cst_43 {dimension_numbers = #tpu.dot_dimension_numbers<[1], [0], [0], [1], [0, 0, 1, 1], [], []>} : vector<12x32xf32>, vector<32x128xf32>, vector<12x128xf32> -> vector<12x128xf32>
    %c112 = arith.constant 112 : index
    %c0_44 = arith.constant 0 : index
    %116 = vector.load %arg2[%c112, %c0_44] : memref<568x768xf32, #tpu.memory_space<vmem>>, vector<1x128xf32>
    %117 = vector.broadcast %116 : vector<1x128xf32> to vector<12x128xf32>
    %118 = arith.addf %115, %117 : vector<12x128xf32>
    %119 = arith.mulf %118, %118 : vector<12x128xf32>
    %120 = arith.mulf %118, %119 : vector<12x128xf32>
    %cst_45 = arith.constant 4.471500e-02 : f32
    %121 = vector.broadcast %cst_45 : f32 to vector<12x128xf32>
    %122 = arith.mulf %121, %120 : vector<12x128xf32>
    %123 = arith.addf %118, %122 : vector<12x128xf32>
    %cst_46 = arith.constant 0.797884583 : f32
    %124 = vector.broadcast %cst_46 : f32 to vector<12x128xf32>
    %125 = arith.mulf %124, %123 : vector<12x128xf32>
    %126 = math.tanh %125 : vector<12x128xf32>
    %cst_47 = arith.constant 1.000000e+00 : f32
    %127 = vector.broadcast %cst_47 : f32 to vector<12x128xf32>
    %128 = arith.addf %127, %126 : vector<12x128xf32>
    %cst_48 = arith.constant 5.000000e-01 : f32
    %129 = vector.broadcast %cst_48 : f32 to vector<12x128xf32>
    %130 = arith.mulf %129, %128 : vector<12x128xf32>
    %131 = arith.mulf %118, %130 : vector<12x128xf32>
    %c120 = arith.constant 120 : index
    %c0_49 = arith.constant 0 : index
    %132 = vector.load %arg2[%c120, %c0_49] : memref<568x768xf32, #tpu.memory_space<vmem>>, vector<128x32xf32>
    %cst_50 = arith.constant dense<0.000000e+00> : vector<12x32xf32>
    %133 = tpu.matmul %131, %132, %cst_50 {dimension_numbers = #tpu.dot_dimension_numbers<[1], [0], [0], [1], [0, 0, 1, 1], [], []>} : vector<12x128xf32>, vector<128x32xf32>, vector<12x32xf32> -> vector<12x32xf32>
    %c248 = arith.constant 248 : index
    %c0_51 = arith.constant 0 : index
    %134 = vector.load %arg2[%c248, %c0_51] : memref<568x768xf32, #tpu.memory_space<vmem>>, vector<1x32xf32>
    %135 = vector.broadcast %134 : vector<1x32xf32> to vector<12x32xf32>
    %136 = arith.addf %133, %135 : vector<12x32xf32>
    %137 = arith.mulf %136, %24 : vector<12x32xf32>
    %138 = arith.addf %91, %137 : vector<12x32xf32>
    %139 = vector.extract_strided_slice %22 {offsets = [0, 768], sizes = [12, 32], strides = [1, 1]} : vector<12x1792xf32> to vector<12x32xf32>
    %140 = vector.extract_strided_slice %22 {offsets = [0, 896], sizes = [12, 32], strides = [1, 1]} : vector<12x1792xf32> to vector<12x32xf32>
    %141 = vector.extract_strided_slice %22 {offsets = [0, 1024], sizes = [12, 32], strides = [1, 1]} : vector<12x1792xf32> to vector<12x32xf32>
    %142 = vector.extract_strided_slice %22 {offsets = [0, 1152], sizes = [12, 32], strides = [1, 1]} : vector<12x1792xf32> to vector<12x32xf32>
    %143 = vector.extract_strided_slice %22 {offsets = [0, 1280], sizes = [12, 32], strides = [1, 1]} : vector<12x1792xf32> to vector<12x32xf32>
    %144 = vector.extract_strided_slice %22 {offsets = [0, 1408], sizes = [12, 32], strides = [1, 1]} : vector<12x1792xf32> to vector<12x32xf32>
    %cst_52 = arith.constant dense<0.000000e+00> : vector<12xf32>
    %145 = vector.multi_reduction <add>, %138, %cst_52 [1] : vector<12x32xf32> to vector<12xf32>
    %146 = vector.shape_cast %145 : vector<12xf32> to vector<12x1xf32>
    %cst_53 = arith.constant 3.200000e+01 : f32
    %147 = vector.broadcast %cst_53 : f32 to vector<12x1xf32>
    %148 = arith.divf %146, %147 : vector<12x1xf32>
    %149 = vector.broadcast %148 : vector<12x1xf32> to vector<12x32xf32>
    %150 = arith.subf %138, %149 : vector<12x32xf32>
    %151 = arith.mulf %150, %150 : vector<12x32xf32>
    %cst_54 = arith.constant dense<0.000000e+00> : vector<12xf32>
    %152 = vector.multi_reduction <add>, %151, %cst_54 [1] : vector<12x32xf32> to vector<12xf32>
    %153 = vector.shape_cast %152 : vector<12xf32> to vector<12x1xf32>
    %cst_55 = arith.constant 3.200000e+01 : f32
    %154 = vector.broadcast %cst_55 : f32 to vector<12x1xf32>
    %155 = arith.divf %153, %154 : vector<12x1xf32>
    %156 = vector.broadcast %148 : vector<12x1xf32> to vector<12x32xf32>
    %157 = arith.subf %138, %156 : vector<12x32xf32>
    %cst_56 = arith.constant 9.99999997E-7 : f32
    %158 = vector.broadcast %cst_56 : f32 to vector<12x1xf32>
    %159 = arith.addf %155, %158 : vector<12x1xf32>
    %160 = math.rsqrt %159 : vector<12x1xf32>
    %161 = vector.broadcast %160 : vector<12x1xf32> to vector<12x32xf32>
    %162 = arith.mulf %157, %161 : vector<12x32xf32>
    %cst_57 = arith.constant 1.000000e+00 : f32
    %163 = vector.broadcast %cst_57 : f32 to vector<12x32xf32>
    %164 = arith.addf %141, %163 : vector<12x32xf32>
    %165 = arith.mulf %162, %164 : vector<12x32xf32>
    %166 = arith.addf %165, %143 : vector<12x32xf32>
    %c256_58 = arith.constant 256 : index
    %c0_59 = arith.constant 0 : index
    %167 = vector.load %arg2[%c256_58, %c0_59] : memref<568x768xf32, #tpu.memory_space<vmem>>, vector<32x768xf32>
    %cst_60 = arith.constant dense<0.000000e+00> : vector<12x768xf32>
    %168 = tpu.matmul %166, %167, %cst_60 {dimension_numbers = #tpu.dot_dimension_numbers<[1], [0], [0], [1], [0, 0, 1, 1], [], []>} : vector<12x32xf32>, vector<32x768xf32>, vector<12x768xf32> -> vector<12x768xf32>
    %c288 = arith.constant 288 : index
    %c0_61 = arith.constant 0 : index
    %169 = vector.load %arg2[%c288, %c0_61] : memref<568x768xf32, #tpu.memory_space<vmem>>, vector<1x768xf32>
    %170 = vector.broadcast %169 : vector<1x768xf32> to vector<12x768xf32>
    %171 = arith.addf %168, %170 : vector<12x768xf32>
    %cst_62 = arith.constant 0.000000e+00 : f32
    %172 = vector.broadcast %cst_62 : f32 to vector<12x32xf32>
    %173 = vector.extract_strided_slice %171 {offsets = [0, 0], sizes = [12, 16], strides = [1, 1]} : vector<12x768xf32> to vector<12x16xf32>
    %174 = vector.extract_strided_slice %171 {offsets = [0, 128], sizes = [12, 16], strides = [1, 1]} : vector<12x768xf32> to vector<12x16xf32>
    %175 = vector.extract_strided_slice %171 {offsets = [0, 256], sizes = [12, 16], strides = [1, 1]} : vector<12x768xf32> to vector<12x16xf32>
    %cst_63 = arith.constant dense<0.000000e+00> : vector<12x12xf32>
    %176 = tpu.matmul %173, %174, %cst_63 {dimension_numbers = #tpu.dot_dimension_numbers<[1], [1], [0], [0], [0, 0, 1, 0], [], []>} : vector<12x16xf32>, vector<12x16xf32>, vector<12x12xf32> -> vector<12x12xf32>
    %177 = arith.addf %176, %4 : vector<12x12xf32>
    %178 = math.exp %177 : vector<12x12xf32>
    %cst_64 = arith.constant dense<0.000000e+00> : vector<12xf32>
    %179 = vector.multi_reduction <add>, %178, %cst_64 [1] : vector<12x12xf32> to vector<12xf32>
    %180 = vector.shape_cast %179 : vector<12xf32> to vector<12x1xf32>
    %181 = tpu.reciprocal %180 {approx = true} : vector<12x1xf32> -> vector<12x1xf32>
    %182 = vector.broadcast %181 : vector<12x1xf32> to vector<12x12xf32>
    %183 = arith.mulf %178, %182 : vector<12x12xf32>
    %cst_65 = arith.constant dense<0.000000e+00> : vector<12x16xf32>
    %184 = tpu.matmul %183, %175, %cst_65 {dimension_numbers = #tpu.dot_dimension_numbers<[1], [0], [0], [1], [0, 0, 1, 1], [], []>} : vector<12x12xf32>, vector<12x16xf32>, vector<12x16xf32> -> vector<12x16xf32>
    %c296 = arith.constant 296 : index
    %c0_66 = arith.constant 0 : index
    %185 = vector.load %arg2[%c296, %c0_66] : memref<568x768xf32, #tpu.memory_space<vmem>>, vector<16x32xf32>
    %cst_67 = arith.constant dense<0.000000e+00> : vector<12x32xf32>
    %186 = tpu.matmul %184, %185, %cst_67 {dimension_numbers = #tpu.dot_dimension_numbers<[1], [0], [0], [1], [0, 0, 1, 1], [], []>} : vector<12x16xf32>, vector<16x32xf32>, vector<12x32xf32> -> vector<12x32xf32>
    %187 = arith.addf %172, %186 : vector<12x32xf32>
    %188 = vector.extract_strided_slice %171 {offsets = [0, 384], sizes = [12, 16], strides = [1, 1]} : vector<12x768xf32> to vector<12x16xf32>
    %189 = vector.extract_strided_slice %171 {offsets = [0, 512], sizes = [12, 16], strides = [1, 1]} : vector<12x768xf32> to vector<12x16xf32>
    %190 = vector.extract_strided_slice %171 {offsets = [0, 640], sizes = [12, 16], strides = [1, 1]} : vector<12x768xf32> to vector<12x16xf32>
    %cst_68 = arith.constant dense<0.000000e+00> : vector<12x12xf32>
    %191 = tpu.matmul %188, %189, %cst_68 {dimension_numbers = #tpu.dot_dimension_numbers<[1], [1], [0], [0], [0, 0, 1, 0], [], []>} : vector<12x16xf32>, vector<12x16xf32>, vector<12x12xf32> -> vector<12x12xf32>
    %192 = arith.addf %191, %4 : vector<12x12xf32>
    %193 = math.exp %192 : vector<12x12xf32>
    %cst_69 = arith.constant dense<0.000000e+00> : vector<12xf32>
    %194 = vector.multi_reduction <add>, %193, %cst_69 [1] : vector<12x12xf32> to vector<12xf32>
    %195 = vector.shape_cast %194 : vector<12xf32> to vector<12x1xf32>
    %196 = tpu.reciprocal %195 {approx = true} : vector<12x1xf32> -> vector<12x1xf32>
    %197 = vector.broadcast %196 : vector<12x1xf32> to vector<12x12xf32>
    %198 = arith.mulf %193, %197 : vector<12x12xf32>
    %cst_70 = arith.constant dense<0.000000e+00> : vector<12x16xf32>
    %199 = tpu.matmul %198, %190, %cst_70 {dimension_numbers = #tpu.dot_dimension_numbers<[1], [0], [0], [1], [0, 0, 1, 1], [], []>} : vector<12x12xf32>, vector<12x16xf32>, vector<12x16xf32> -> vector<12x16xf32>
    %c312 = arith.constant 312 : index
    %c0_71 = arith.constant 0 : index
    %200 = vector.load %arg2[%c312, %c0_71] : memref<568x768xf32, #tpu.memory_space<vmem>>, vector<16x32xf32>
    %cst_72 = arith.constant dense<0.000000e+00> : vector<12x32xf32>
    %201 = tpu.matmul %199, %200, %cst_72 {dimension_numbers = #tpu.dot_dimension_numbers<[1], [0], [0], [1], [0, 0, 1, 1], [], []>} : vector<12x16xf32>, vector<16x32xf32>, vector<12x32xf32> -> vector<12x32xf32>
    %202 = arith.addf %187, %201 : vector<12x32xf32>
    %c328 = arith.constant 328 : index
    %c0_73 = arith.constant 0 : index
    %203 = vector.load %arg2[%c328, %c0_73] : memref<568x768xf32, #tpu.memory_space<vmem>>, vector<1x32xf32>
    %204 = vector.broadcast %203 : vector<1x32xf32> to vector<12x32xf32>
    %205 = arith.addf %202, %204 : vector<12x32xf32>
    %206 = arith.mulf %205, %139 : vector<12x32xf32>
    %207 = arith.addf %138, %206 : vector<12x32xf32>
    %cst_74 = arith.constant dense<0.000000e+00> : vector<12xf32>
    %208 = vector.multi_reduction <add>, %207, %cst_74 [1] : vector<12x32xf32> to vector<12xf32>
    %209 = vector.shape_cast %208 : vector<12xf32> to vector<12x1xf32>
    %cst_75 = arith.constant 3.200000e+01 : f32
    %210 = vector.broadcast %cst_75 : f32 to vector<12x1xf32>
    %211 = arith.divf %209, %210 : vector<12x1xf32>
    %212 = vector.broadcast %211 : vector<12x1xf32> to vector<12x32xf32>
    %213 = arith.subf %207, %212 : vector<12x32xf32>
    %214 = arith.mulf %213, %213 : vector<12x32xf32>
    %cst_76 = arith.constant dense<0.000000e+00> : vector<12xf32>
    %215 = vector.multi_reduction <add>, %214, %cst_76 [1] : vector<12x32xf32> to vector<12xf32>
    %216 = vector.shape_cast %215 : vector<12xf32> to vector<12x1xf32>
    %cst_77 = arith.constant 3.200000e+01 : f32
    %217 = vector.broadcast %cst_77 : f32 to vector<12x1xf32>
    %218 = arith.divf %216, %217 : vector<12x1xf32>
    %219 = vector.broadcast %211 : vector<12x1xf32> to vector<12x32xf32>
    %220 = arith.subf %207, %219 : vector<12x32xf32>
    %cst_78 = arith.constant 9.99999997E-7 : f32
    %221 = vector.broadcast %cst_78 : f32 to vector<12x1xf32>
    %222 = arith.addf %218, %221 : vector<12x1xf32>
    %223 = math.rsqrt %222 : vector<12x1xf32>
    %224 = vector.broadcast %223 : vector<12x1xf32> to vector<12x32xf32>
    %225 = arith.mulf %220, %224 : vector<12x32xf32>
    %cst_79 = arith.constant 1.000000e+00 : f32
    %226 = vector.broadcast %cst_79 : f32 to vector<12x32xf32>
    %227 = arith.addf %142, %226 : vector<12x32xf32>
    %228 = arith.mulf %225, %227 : vector<12x32xf32>
    %229 = arith.addf %228, %144 : vector<12x32xf32>
    %c336 = arith.constant 336 : index
    %c0_80 = arith.constant 0 : index
    %230 = vector.load %arg2[%c336, %c0_80] : memref<568x768xf32, #tpu.memory_space<vmem>>, vector<32x128xf32>
    %cst_81 = arith.constant dense<0.000000e+00> : vector<12x128xf32>
    %231 = tpu.matmul %229, %230, %cst_81 {dimension_numbers = #tpu.dot_dimension_numbers<[1], [0], [0], [1], [0, 0, 1, 1], [], []>} : vector<12x32xf32>, vector<32x128xf32>, vector<12x128xf32> -> vector<12x128xf32>
    %c368 = arith.constant 368 : index
    %c0_82 = arith.constant 0 : index
    %232 = vector.load %arg2[%c368, %c0_82] : memref<568x768xf32, #tpu.memory_space<vmem>>, vector<1x128xf32>
    %233 = vector.broadcast %232 : vector<1x128xf32> to vector<12x128xf32>
    %234 = arith.addf %231, %233 : vector<12x128xf32>
    %235 = arith.mulf %234, %234 : vector<12x128xf32>
    %236 = arith.mulf %234, %235 : vector<12x128xf32>
    %cst_83 = arith.constant 4.471500e-02 : f32
    %237 = vector.broadcast %cst_83 : f32 to vector<12x128xf32>
    %238 = arith.mulf %237, %236 : vector<12x128xf32>
    %239 = arith.addf %234, %238 : vector<12x128xf32>
    %cst_84 = arith.constant 0.797884583 : f32
    %240 = vector.broadcast %cst_84 : f32 to vector<12x128xf32>
    %241 = arith.mulf %240, %239 : vector<12x128xf32>
    %242 = math.tanh %241 : vector<12x128xf32>
    %cst_85 = arith.constant 1.000000e+00 : f32
    %243 = vector.broadcast %cst_85 : f32 to vector<12x128xf32>
    %244 = arith.addf %243, %242 : vector<12x128xf32>
    %cst_86 = arith.constant 5.000000e-01 : f32
    %245 = vector.broadcast %cst_86 : f32 to vector<12x128xf32>
    %246 = arith.mulf %245, %244 : vector<12x128xf32>
    %247 = arith.mulf %234, %246 : vector<12x128xf32>
    %c376 = arith.constant 376 : index
    %c0_87 = arith.constant 0 : index
    %248 = vector.load %arg2[%c376, %c0_87] : memref<568x768xf32, #tpu.memory_space<vmem>>, vector<128x32xf32>
    %cst_88 = arith.constant dense<0.000000e+00> : vector<12x32xf32>
    %249 = tpu.matmul %247, %248, %cst_88 {dimension_numbers = #tpu.dot_dimension_numbers<[1], [0], [0], [1], [0, 0, 1, 1], [], []>} : vector<12x128xf32>, vector<128x32xf32>, vector<12x32xf32> -> vector<12x32xf32>
    %c504 = arith.constant 504 : index
    %c0_89 = arith.constant 0 : index
    %250 = vector.load %arg2[%c504, %c0_89] : memref<568x768xf32, #tpu.memory_space<vmem>>, vector<1x32xf32>
    %251 = vector.broadcast %250 : vector<1x32xf32> to vector<12x32xf32>
    %252 = arith.addf %249, %251 : vector<12x32xf32>
    %253 = arith.mulf %252, %140 : vector<12x32xf32>
    %254 = arith.addf %207, %253 : vector<12x32xf32>
    %255 = vector.extract_strided_slice %22 {offsets = [0, 1536], sizes = [12, 32], strides = [1, 1]} : vector<12x1792xf32> to vector<12x32xf32>
    %256 = vector.extract_strided_slice %22 {offsets = [0, 1664], sizes = [12, 32], strides = [1, 1]} : vector<12x1792xf32> to vector<12x32xf32>
    %cst_90 = arith.constant dense<0.000000e+00> : vector<12xf32>
    %257 = vector.multi_reduction <add>, %254, %cst_90 [1] : vector<12x32xf32> to vector<12xf32>
    %258 = vector.shape_cast %257 : vector<12xf32> to vector<12x1xf32>
    %cst_91 = arith.constant 3.200000e+01 : f32
    %259 = vector.broadcast %cst_91 : f32 to vector<12x1xf32>
    %260 = arith.divf %258, %259 : vector<12x1xf32>
    %261 = vector.broadcast %260 : vector<12x1xf32> to vector<12x32xf32>
    %262 = arith.subf %254, %261 : vector<12x32xf32>
    %263 = arith.mulf %262, %262 : vector<12x32xf32>
    %cst_92 = arith.constant dense<0.000000e+00> : vector<12xf32>
    %264 = vector.multi_reduction <add>, %263, %cst_92 [1] : vector<12x32xf32> to vector<12xf32>
    %265 = vector.shape_cast %264 : vector<12xf32> to vector<12x1xf32>
    %cst_93 = arith.constant 3.200000e+01 : f32
    %266 = vector.broadcast %cst_93 : f32 to vector<12x1xf32>
    %267 = arith.divf %265, %266 : vector<12x1xf32>
    %268 = vector.broadcast %260 : vector<12x1xf32> to vector<12x32xf32>
    %269 = arith.subf %254, %268 : vector<12x32xf32>
    %cst_94 = arith.constant 9.99999997E-7 : f32
    %270 = vector.broadcast %cst_94 : f32 to vector<12x1xf32>
    %271 = arith.addf %267, %270 : vector<12x1xf32>
    %272 = math.rsqrt %271 : vector<12x1xf32>
    %273 = vector.broadcast %272 : vector<12x1xf32> to vector<12x32xf32>
    %274 = arith.mulf %269, %273 : vector<12x32xf32>
    %cst_95 = arith.constant 1.000000e+00 : f32
    %275 = vector.broadcast %cst_95 : f32 to vector<12x32xf32>
    %276 = arith.addf %255, %275 : vector<12x32xf32>
    %277 = arith.mulf %274, %276 : vector<12x32xf32>
    %278 = arith.addf %277, %256 : vector<12x32xf32>
    %c528 = arith.constant 528 : index
    %c0_96 = arith.constant 0 : index
    %279 = vector.load %arg2[%c528, %c0_96] : memref<568x768xf32, #tpu.memory_space<vmem>>, vector<32x128xf32>
    %cst_97 = arith.constant dense<0.000000e+00> : vector<12x128xf32>
    %280 = tpu.matmul %278, %279, %cst_97 {dimension_numbers = #tpu.dot_dimension_numbers<[1], [0], [0], [1], [0, 0, 1, 1], [], []>} : vector<12x32xf32>, vector<32x128xf32>, vector<12x128xf32> -> vector<12x128xf32>
    %c560 = arith.constant 560 : index
    %c0_98 = arith.constant 0 : index
    %281 = vector.load %arg2[%c560, %c0_98] : memref<568x768xf32, #tpu.memory_space<vmem>>, vector<1x128xf32>
    %282 = vector.broadcast %281 : vector<1x128xf32> to vector<12x128xf32>
    %283 = arith.addf %280, %282 : vector<12x128xf32>
    %c0_99 = arith.constant 0 : index
    %c0_100 = arith.constant 0 : index
    %284 = vector.load %arg3[%c0_99, %c0_100] : memref<12x128xf32, #tpu.memory_space<vmem>>, vector<12x128xf32>
    tpu.vector_store %arg3[%c0_99, %c0_100], %283 {strides = array<i32>} : memref<12x128xf32, #tpu.memory_space<vmem>>, vector<12x128xf32>,
    return
  }
}

</mosaic_0001>

<bundles_post_ra>
// kernel: var_forward.1
= control target key start
LH: loop header
LB: loop body
LE: loop exit
PB: predicated region body
PF: predicated region fallthrough
CT: control target
= control target key end

     0   :  { %8 = vsyncpa [#allocation3], 0  ;;  %s4389_s0 = inlined_call_operand.vmem [shape: f32[12,640], index: 0, kind: input, shape index: {}]   ;;  %s4390_s1 = inlined_call_operand.hbm [shape: f32[40,1792], index: 1, kind: input, shape index: {}]   ;;  %s4391_s2 = inlined_call_operand.hbm [shape: f32[568,768], index: 2, kind: input, shape index: {}]   ;;  %s4392_s3 = inlined_call_operand.vmem [shape: f32[12,128], index: 3, kind: output, shape index: {}]  }
   0x1   :  { %9 = vsyncpa [#allocation5], 0  ;;  %s3927_s12 = smov [#allocation2]   ;;  %s3879_s16 = scalar_lea.hbm %s4390_s1, 8960 }
   0x2   :  { %s17_s13 = sshll.u32 %s3927_s12, 4  ;;  %p3880_p0 = scmp.ne.s32.totalorder %s4390_s1, %s3879_s16  ;;  %s18_s13 = int_to_ptr.vmem [resolvable:$true] %s17_s13 }
   0x3   :  { %p3883_p1 = scmp.lt.u32.totalorder %s3879_s16, %s4390_s1 }
   0x5   :  { %p3885_p2 = pnand %p3883_p1, %p3880_p0 }
   0x7   :  { %3888 = shalt.err (!%p3885_p2)
}
   0x8   :  { %s3889_s21 = scalar_lea.vmem %s18_s13, 8960  ;;  %p3894_p4 = scmp.lt.s32.totalorder %s18_s13, %s18_s13 }
   0x9   :  { %p3890_p3 = scmp.ne.s32.totalorder %s18_s13, %s3889_s21  ;;  %p3895_p5 = scmp.lt.s32.totalorder %s3889_s21, %s3889_s21 }
   0xb   :  { %p3896_p6 = por %p3895_p5, %p3894_p4 }
   0xd   :  { %p3897_p7 = pnand %p3896_p6, %p3890_p3 }
   0xf   :  { %3900 = shalt.err (!%p3897_p7)
}
  0x10   :  { %s3928_s22 = smov 1792   ;;  %s3929_s23 = smov 112  }
  0x11   :  { %23 = dma.hbm_to_vmem [thread:$0]  %s4390_s1, 8960, %s18_s13, [#allocation3], %s3928_s22, %s3928_s22, %s3929_s23  }
  0x12   :  { %s3930_s26 = smov [#allocation4]   ;;  %s3901_s30 = scalar_lea.hbm %s4391_s2, 54528 }
  0x13   :  { %s29_s27 = sshll.u32 %s3930_s26, 4  ;;  %p3902_p8 = scmp.ne.s32.totalorder %s4391_s2, %s3901_s30  ;;  %s30_s27 = int_to_ptr.vmem [resolvable:$true] %s29_s27 }
  0x14   :  { %p3905_p9 = scmp.lt.u32.totalorder %s3901_s30, %s4391_s2 }
  0x16   :  { %p3907_p10 = pnand %p3905_p9, %p3902_p8 }
  0x18   :  { %3910 = shalt.err (!%p3907_p10)
}
  0x19   :  { %s3911_s8 = scalar_lea.vmem %s30_s27, 54528  ;;  %p3916_p12 = scmp.lt.s32.totalorder %s30_s27, %s30_s27 }
  0x1a   :  { %p3912_p11 = scmp.ne.s32.totalorder %s30_s27, %s3911_s8  ;;  %p3917_p13 = scmp.lt.s32.totalorder %s3911_s8, %s3911_s8 }
  0x1c   :  { %p3918_p0 = por %p3917_p13, %p3916_p12 }
  0x1e   :  { %p3919_p1 = pnand %p3918_p0, %p3912_p11 }
  0x20   :  { %3922 = shalt.err (!%p3919_p1)
}
  0x21   :  { %s3931_s1 = smov 768   ;;  %s3932_s9 = smov 48  }
  0x22   :  { %35 = dma.hbm_to_vmem [thread:$0]  %s4391_s2, 54528, %s30_s27, [#allocation5], %s3931_s1, %s3931_s1, %s3932_s9  }
  0x23   :  { %3923 = dma.done.wait [#allocation3], 8960  }
  0x24   :  { %3924 = vsyncadd [#allocation3], 4294958336 }
  0x25   :  { %3925 = dma.done.wait [#allocation5], 54528  }
  0x26   :  { %3926 = vsyncadd [#allocation5], 4294912768  ;;  %vm68_vm0 = vcmask 64512   ;;  %v66_v0 = vld [vmem:[#allocation4 + $0xc00] sm:$0xff]  ;;  %v44_v1 = vld [vmem:[%s4389_s0 + $0x8] sm:$0xff]  ;;  %v3933_v10 = vmov 0.0  }
  0x27   :  { %v45_v2 = vld [vmem:[%s4389_s0 + $0x30] sm:$0xf]  ;;  %3351 = vmatprep.subr.mxu1 %v66_v0  ;;  %3353 = vmatprep.mubr.msk.f32.mxu1 %vm68_vm0, %v44_v1  ;;  %v155_v3 = vld [vmem:[#allocation2 + $0x8] sm:$0xff]  ;;  %v169_v4 = vld [vmem:[#allocation2 + $0x78] sm:$0xff]  ;;  %vm290_vm1 = vcmask 261120   ;;  %vm839_vm2 = vcmask 257024  }
  0x28   :  { %3352 = vmatpush3.msra.mxu1 %v66_v0  ;;  %v154_v5 = vld [vmem:[#allocation2] sm:$0xff]  ;;  %v3543_v6 = vpack.c.bf16 %v169_v4, %v155_v3  ;;  %v168_v7 = vld [vmem:[#allocation2 + $0x70] sm:$0xff]  ;;  %v183_v8 = vld [vmem:[#allocation2 + $0xe8] sm:$0xff]  ;;  %592 = vmatprep.mubr.f32.mxu0 %v3933_v10  ;;  %vm1166_vm3 = vcmask 130048   ;;  %vm1276_vm4 = vcmask 1043456   ;;  %vm3934_vm5 = vmmov 1  }
  0x29   :  { %3354 = vmatmul.mubr.msk.f32.vlgmr.msra.gmra.mrb[0].mxu1 %vm68_vm0, %v45_v2  ;;  %v197_v9 = vld [vmem:[#allocation2 + $0x158] sm:$0xff]  ;;  %v3545_v11 = vpack.c.bf16 %v168_v7, %v154_v5  ;;  %v182_v13 = vld [vmem:[#allocation2 + $0xe0] sm:$0xff]  ;;  %v196_v14 = vld [vmem:[#allocation2 + $0x150] sm:$0xff]  ;;  %vm1262_vm8 = vcmask 93184   ;;  %vm1258_vm9 = vcmask 97280  }
  0x2a   :  { %361 = vmatprep.mubr.f32.mxu1 %v3933_v10  ;;  %v3547_v12 = vpack.c.bf16 %v197_v9, %v183_v8  ;;  %v42_v15 = vld [vmem:[%s4389_s0] sm:$0xff]  ;;  %3544 = vmatprep.subr.bf16.mxu1 %v3543_v6  ;;  %v157_v17 = vld [vmem:[#allocation2 + $0x18] sm:$0xff]  ;;  %v171_v18 = vld [vmem:[#allocation2 + $0x88] sm:$0xff]  ;;  %v3549_v19 = vpack.c.bf16 %v196_v14, %v182_v13 }
  0x2b   :  { %v3174_v16 = vmul.f32 -1.442695, %v42_v15  ;;  %3546 = vmatpush1.bf16.msra.mxu1 %v3545_v11  ;;  %v43_v20 = vld [vmem:[%s4389_s0 + $0x28] sm:$0xf]  ;;  %v3551_v21 = vpack.c.bf16 %v171_v18, %v157_v17  ;;  %v156_v27 = vld [vmem:[#allocation2 + $0x10] sm:$0xff]  ;;  %v170_v28 = vld [vmem:[#allocation2 + $0x80] sm:$0xff] }
  0x2c   :  { %3548 = vmatprep.subr.bf16.mxu1 %v3547_v12  ;;  %v3175_v22 = vmul.f32 -1.442695, %v43_v20  ;;  %v185_v29 = vld [vmem:[#allocation2 + $0xf8] sm:$0xff]  ;;  %v199_v30 = vld [vmem:[#allocation2 + $0x168] sm:$0xff]  ;;  %v3553_v32 = vpack.c.bf16 %v170_v28, %v156_v27  ;;  %v184_v35 = vld [vmem:[#allocation2 + $0xf0] sm:$0xff] }
  0x2d   :  { %3811 = vpow2.f32 %v3174_v16  ;;  %v3555_v34 = vpack.c.bf16 %v199_v30, %v185_v29  ;;  %v198_v36 = vld [vmem:[#allocation2 + $0x160] sm:$0xff]  ;;  %v159_v38 = vld [vmem:[#allocation2 + $0x28] sm:$0xff]  ;;  %v173_v39 = vld [vmem:[#allocation2 + $0x98] sm:$0xff] }
  0x2e   :  { %3813 = vpow2.f32 %v3175_v22  ;;  %v3557_v41 = vpack.c.bf16 %v198_v36, %v184_v35  ;;  %v3559_v42 = vpack.c.bf16 %v173_v39, %v159_v38  ;;  %v158_v43 = vld [vmem:[#allocation2 + $0x20] sm:$0xff]  ;;  %v172_v44 = vld [vmem:[#allocation2 + $0x90] sm:$0xff]  ;;  %v187_v45 = vld [vmem:[#allocation2 + $0x108] sm:$0xff] }
  0x2f   :  { %3550 = vmatpush1.bf16.msra.mxu1 %v3549_v19  ;;  %v201_v46 = vld [vmem:[#allocation2 + $0x178] sm:$0xff]  ;;  %v3561_v47 = vpack.c.bf16 %v172_v44, %v158_v43  ;;  %v186_v49 = vld [vmem:[#allocation2 + $0x100] sm:$0xff]  ;;  %v200_v50 = vld [vmem:[#allocation2 + $0x170] sm:$0xff] }
  0x30   :  { %3552 = vmatprep.subr.bf16.mxu1 %v3551_v21  ;;  %v3563_v48 = vpack.c.bf16 %v201_v46, %v187_v45  ;;  %v3565_v51 = vpack.c.bf16 %v200_v50, %v186_v49  ;;  %v67_v52 = vld [vmem:[#allocation4 + $0xc30] ss:$0 sm:$0xff]  ;;  %v48_v56 = vld [vmem:[%s4389_s0 + $0x18] sm:$0xff]  ;;  %v46_v59 = vld [vmem:[%s4389_s0 + $0x10] sm:$0xff] }
  0x31   :  { %v49_v54 = vld [vmem:[%s4389_s0 + $0x40] sm:$0xf]  ;;  %v47_v62 = vld [vmem:[%s4389_s0 + $0x38] sm:$0xf]  ;;  %v175_v4 = vld [vmem:[#allocation2 + $0xa8] sm:$0xff] }
  0x32   :  { %v161_v3 = vld [vmem:[#allocation2 + $0x38] sm:$0xff]  ;;  %v160_v5 = vld [vmem:[#allocation2 + $0x30] sm:$0xff]  ;;  %v174_v7 = vld [vmem:[#allocation2 + $0xa0] sm:$0xff] }
  0x33   :  { %v3567_v6 = vpack.c.bf16 %v175_v4, %v161_v3  ;;  %v163_v8 = vld [vmem:[#allocation2 + $0x48] sm:$0xff]  ;;  %v177_v9 = vld [vmem:[#allocation2 + $0xb8] sm:$0xff]  ;;  %v3569_v11 = vpack.c.bf16 %v174_v7, %v160_v5  ;;  %v162_v13 = vld [vmem:[#allocation2 + $0x40] sm:$0xff] }
  0x34   :  { %v3575_v12 = vpack.c.bf16 %v177_v9, %v163_v8  ;;  %v176_v14 = vld [vmem:[#allocation2 + $0xb0] sm:$0xff]  ;;  %v203_v27 = vld [vmem:[#allocation2 + $0x188] sm:$0xff]  ;;  %v202_v30 = vld [vmem:[#allocation2 + $0x180] sm:$0xff] }
  0x35   :  { %3568 = vmatprep.subr.bf16.mxu0 %v3567_v6  ;;  %v188_v29 = vld [vmem:[#allocation2 + $0x110] sm:$0xff]  ;;  %v205_v35 = vld [vmem:[#allocation2 + $0x198] sm:$0xff]  ;;  %v190_v36 = vld [vmem:[#allocation2 + $0x120] sm:$0xff] }
  0x36   :  { %3570 = vmatpush1.bf16.msra.mxu0 %v3569_v11  ;;  %v179_v43 = vld [vmem:[#allocation2 + $0xc8] sm:$0xff]  ;;  %v164_v45 = vld [vmem:[#allocation2 + $0x50] sm:$0xff]  ;;  %v178_v46 = vld [vmem:[#allocation2 + $0xc0] sm:$0xff] }
  0x37   :  { %v3812_v23 = vpop.eup %3811  ;;  %v3585_v49 = vpack.c.bf16 %v178_v46, %v164_v45  ;;  %v181_v50 = vld [vmem:[#allocation2 + $0xd8] sm:$0xff]  ;;  %v194_v3 = vld [vmem:[#allocation2 + $0x140] sm:$0xff]  ;;  %v208_v4 = vld [vmem:[#allocation2 + $0x1b0] sm:$0xff] }
  0x38   :  { %v58_v24 = vadd.f32 1.0, %v3812_v23  ;;  %v3814_v25 = vpop.eup %3813  ;;  %v3597_v7 = vpack.c.bf16 %v208_v4, %v194_v3  ;;  %v871_v8 = vld [vmem:[#allocation4 + $0x8] sm:$0xff]  ;;  %v877_v9 = vld [vmem:[#allocation4 + $0x38] sm:$0xff]  ;;  %vm4177_vm6 = vmpackc.low %vm1276_vm4, %vm3934_vm5 }
  0x39   :  { %v59_v26 = vadd.f32 1.0, %v3814_v25  ;;  %v873_v11 = vld [vmem:[#allocation4 + $0x18] sm:$0xff]  ;;  %vm4183_vm7 = vmpackc.low %vm1166_vm3, %vm1166_vm3 }
  0x3a   :  { %3815 = vrcp.f32 %v58_v24 }
  0x3b   :  { %3817 = vrcp.f32 %v59_v26  ;;  %v189_v26 = vld [vmem:[#allocation2 + $0x118] sm:$0xff] }
  0x3c   :  { %v3571_v28 = vpack.c.bf16 %v203_v27, %v189_v26  ;;  %v889_v26 = vld [vmem:[#allocation4 + $0x98] sm:$0xff] }
  0x3d   :  { %v885_v27 = vld [vmem:[#allocation4 + $0x78] sm:$0xff] }
  0x3e   :  { %3572 = vmatprep.subr.bf16.mxu0 %v3571_v28 }
  0x44   :  { %v3816_v31 = vpop.eup %3815 }
  0x45   :  { %v3993_v33 = vmul.f32 %v3816_v31, %v42_v15  ;;  %v3818_v37 = vpop.eup %3817  ;;  %v3577_v15 = vpack.c.bf16 %v176_v14, %v162_v13  ;;  %v191_v31 = vld [vmem:[#allocation2 + $0x128] sm:$0xff]  ;;  %v3599_v13 = vpack.c.bf16 %v877_v9, %v871_v8  ;;  %v870_v14 = vld [vmem:[#allocation4] sm:$0xff] }
  0x46   :  { %v3997_v40 = vmul.f32 %v3818_v37, %v43_v20  ;;  %v204_v37 = vld [vmem:[#allocation2 + $0x190] sm:$0xff]  ;;  %v3579_v39 = vpack.c.bf16 %v205_v35, %v191_v31  ;;  %v888_v31 = vld [vmem:[#allocation4 + $0x90] sm:$0xff] }
  0x47   :  { %3178 = vmatmul.mubr.msk.f32.vlgmr.msra.gmra.mrb[2].mxu1 %vm290_vm1, %v3993_v33  ;;  %v874_v9 = vld [vmem:[#allocation4 + $0x20] sm:$0xff] }
  0x48   :  { %3554 = vmatpush1.bf16.msra.mxu1 %v3553_v32  ;;  %367 = vmatprep.mubr.f32.mxu1 %v3933_v10 }
  0x49   :  { %3556 = vmatprep.subr.bf16.mxu1 %v3555_v34  ;;  %v3573_v34 = vpack.c.bf16 %v202_v30, %v188_v29  ;;  %v882_v30 = vld [vmem:[#allocation4 + $0x60] sm:$0xff] }
  0x4b   :  { %3179 = vmatmul.mubr.msk.f32.gmra.mrb[4].mxu1 %vm290_vm1, %v3997_v40  ;;  %3574 = vmatpush1.bf16.msra.mxu0 %v3573_v34  ;;  %v891_v34 = vld [vmem:[#allocation4 + $0xa8] sm:$0xff] }
  0x4c   :  { %3558 = vmatpush1.bf16.msra.mxu1 %v3557_v41  ;;  %438 = vmatprep.mubr.f32.mxu1 %v3933_v10  ;;  %v3581_v41 = vpack.c.bf16 %v204_v37, %v190_v36  ;;  %v3605_v36 = vpack.c.bf16 %v888_v31, %v882_v30  ;;  %v884_v37 = vld [vmem:[#allocation4 + $0x70] sm:$0xff] }
  0x4d   :  { %3560 = vmatprep.subr.bf16.mxu1 %v3559_v42  ;;  %v165_v42 = vld [vmem:[#allocation2 + $0x58] sm:$0xff] }
  0x4e   :  { %v3583_v44 = vpack.c.bf16 %v179_v43, %v165_v42  ;;  %3184 = vmatmul.mubr.msk.f32.vlgmr.msra.gmra.mrb[0].mxu0 %vm290_vm1, %v3993_v33  ;;  %v875_v42 = vld [vmem:[#allocation4 + $0x28] sm:$0xff]  ;;  %v881_v43 = vld [vmem:[#allocation4 + $0x58] sm:$0xff] }
  0x4f   :  { %3180 = vmatmul.mubr.msk.f32.vlgmr.msra.gmra.mrb[6].mxu1 %vm290_vm1, %v3993_v33  ;;  %598 = vmatprep.mubr.f32.mxu0 %v3933_v10  ;;  %v3615_v45 = vpack.c.bf16 %v881_v43, %v875_v42 }
  0x50   :  { %3562 = vmatpush1.bf16.msra.mxu1 %v3561_v47  ;;  %444 = vmatprep.mubr.f32.mxu1 %v3933_v10  ;;  %v167_v47 = vld [vmem:[#allocation2 + $0x68] sm:$0xff] }
  0x51   :  { %3564 = vmatprep.subr.bf16.mxu1 %v3563_v48  ;;  %3584 = vmatprep.subr.bf16.mxu0 %v3583_v44 }
  0x52   :  { %3586 = vmatpush1.bf16.msra.mxu0 %v3585_v49 }
  0x53   :  { %3181 = vmatmul.mubr.msk.f32.gmra.mrb[8].mxu1 %vm290_vm1, %v3997_v40  ;;  %3185 = vmatmul.mubr.msk.f32.gmra.mrb[2].mxu0 %vm290_vm1, %v3997_v40 }
  0x54   :  { %3566 = vmatpush1.bf16.msra.mxu1 %v3565_v51  ;;  %515 = vmatprep.mubr.f32.mxu1 %v3933_v10  ;;  %v166_v51 = vld [vmem:[#allocation2 + $0x60] sm:$0xff] }
  0x55   :  { %3576 = vmatprep.subr.bf16.mxu1 %v3575_v12  ;;  %746 = vmatprep.mubr.f32.mxu0 %v3933_v10 }
  0x57   :  { %3182 = vmatmul.mubr.msk.f32.vlgmr.msra.gmra.mrb[10].mxu1 %vm290_vm1, %v3993_v33 }
  0x58   :  { %521 = vmatprep.mubr.f32.mxu1 %v3933_v10  ;;  %3578 = vmatpush1.bf16.msra.mxu1 %v3577_v15  ;;  %v876_v15 = vld [vmem:[#allocation4 + $0x30] sm:$0xff] }
  0x59   :  { %3580 = vmatprep.subr.bf16.mxu1 %v3579_v39  ;;  %v890_v39 = vld [vmem:[#allocation4 + $0xa0] sm:$0xff] }
  0x5b   :  { %3183 = vmatmul.mubr.msk.f32.gmra.mrb[12].mxu1 %vm290_vm1, %v3997_v40 }
  0x5c   :  { %669 = vmatprep.mubr.f32.mxu1 %v3933_v10  ;;  %3582 = vmatpush1.bf16.msra.mxu1 %v3581_v41  ;;  %v3613_v41 = vpack.c.bf16 %v890_v39, %v884_v37 }
  0x5f   :  { %3186 = vmatmul.mubr.msk.f32.vlgmr.msra.gmra.mrb[14].mxu1 %vm290_vm1, %v3993_v33 }
  0x60   :  { %675 = vmatprep.mubr.f32.mxu1 %v3933_v10 }
  0x63   :  { %3187 = vmatmul.mubr.msk.f32.gmra.mrb[16].mxu1 %vm290_vm1, %v3997_v40 }
  0x64   :  { %823 = vmatprep.mubr.f32.mxu1 %v3933_v10 }
  0xfc   :  { %v3355_v53 = vpop.f32.mrb[0].mxu1 }
  0xfd   :  { %v147_v55 = vadd.f32 %v3355_v53, %v67_v52  ;;  %v141_v57 = vpop.f32.mrb[1].mxu1 }
  0xfe   :  { %v142_v58 = vadd.f32 %v141_v57, %v67_v52  ;;  %v180_v52 = vld [vmem:[#allocation2 + $0xd0] sm:$0xff]  ;;  %v207_v57 = vld [vmem:[#allocation2 + $0x1a8] sm:$0xff] }
  0xff   :  { %v151_v60 = vmul.f32 %v147_v55, %v49_v54  ;;  %v3591_v54 = vpack.c.bf16 %v181_v50, %v167_v47  ;;  %v3593_v55 = vpack.c.bf16 %v180_v52, %v166_v51  ;;  %v220_v47 = vlaneseq  ;;  %v211_v51 = vld [vmem:[#allocation2 + $0x1c0] ss:$8 sm:$0xf] }
 0x100   :  { %v150_v61 = vmul.f32 %v142_v58, %v48_v56  ;;  %v193_v56 = vld [vmem:[#allocation2 + $0x138] sm:$0xff] }
 0x101   :  { %v4029_v0 = vadd.f32 %v151_v60, %v47_v62  ;;  %3592 = vmatprep.subr.bf16.mxu1 %v3591_v54  ;;  %v3587_v58 = vpack.c.bf16 %v207_v57, %v193_v56  ;;  %v206_v60 = vld [vmem:[#allocation2 + $0x1a0] sm:$0xff]  ;;  %v4091_v52 = vshrl.u32 %v220_v47, 7 }
 0x102   :  { %v4027_v63 = vadd.f32 %v150_v61, %v46_v59  ;;  %v192_v59 = vld [vmem:[#allocation2 + $0x130] sm:$0xff]  ;;  %v195_v61 = vld [vmem:[#allocation2 + $0x148] sm:$0xff]  ;;  %3594 = vmatpush1.bf16.msra.mxu1 %v3593_v55 }
 0x103   :  { %v840_v2 = vsel %vm839_vm2, %v4029_v0, 0.0  ;;  %3588 = vmatprep.subr.bf16.mxu0 %v3587_v58  ;;  %v4094_v56 = vsub.s32 2, %v4091_v52  ;;  %v4133_v39 = vsub.s32 3, %v4091_v52 }
 0x104   :  { %v836_v1 = vsel %vm290_vm1, %v4027_v63, 0.0 }
 0x105   :  { %837 = vadd.xlane.f32.xlu0 %v836_v1  ;;  %v3589_v1 = vpack.c.bf16 %v206_v60, %v192_v59 }
 0x107   :  { %3590 = vmatpush1.bf16.msra.mxu0 %v3589_v1 }
 0x108   :  { %3600 = vmatprep.subr.bf16.mxu0 %v3599_v13  ;;  %v887_v13 = vld [vmem:[#allocation4 + $0x88] sm:$0xff] }
 0x109   :  { %841 = vadd.xlane.f32.xlu0 %v840_v2  ;;  %v209_v2 = vld [vmem:[#allocation2 + $0x1b8] sm:$0xff] }
 0x10a   :  { %v3595_v6 = vpack.c.bf16 %v209_v2, %v195_v61  ;;  %3188 = vmatmul.mubr.msk.f32.vlgmr.msra.gmra.mrb[4].mxu0 %vm290_vm1, %v3993_v33  ;;  %v4101_v61 = vsub.s32 4, %v4091_v52 }
 0x10b   :  { %752 = vmatprep.mubr.f32.mxu0 %v3933_v10 }
 0x10c   :  { %3596 = vmatprep.subr.bf16.mxu1 %v3595_v6 }
 0x10d   :  { %3598 = vmatpush1.bf16.msra.mxu1 %v3597_v7 }
 0x10e   :  { %3189 = vmatmul.mubr.msk.f32.gmra.mrb[6].mxu0 %vm290_vm1, %v3997_v40 }
 0x10f   :  { %999 = vmatprep.mubr.f32.mxu0 %v3933_v10 }
 0x110   :  { %3190 = vmatmul.mubr.msk.f32.vlgmr.msra.gmra.mrb[18].mxu1 %vm290_vm1, %v3993_v33  ;;  %v3611_v33 = vpack.c.bf16 %v891_v34, %v885_v27 }
 0x111   :  { %829 = vmatprep.mubr.f32.mxu1 %v3933_v10 }
 0x114   :  { %3191 = vmatmul.mubr.msk.f32.gmra.mrb[20].mxu1 %vm290_vm1, %v3997_v40  ;;  %v212_v40 = vld [vmem:[#allocation2 + $0x1c0] ss:$8 sm:$0xf0] }
 0x115   :  { %1076 = vmatprep.mubr.f32.mxu1 %v3933_v10  ;;  %v4096_v58 = vor.u32 %v212_v40, %v211_v51 }
 0x117   :  { %v231_v60 = vrot.slane %v4096_v58, %v4094_v56  ;;  %v239_v2 = vrot.slane %v4096_v58, %v4101_v61 }
 0x11a   :  { %v4047_v32 = vpop.f32.mrb[2].mxu1 }
 0x11b   :  { %v4049_v38 = vpop.f32.mrb[3].mxu1 }
 0x11e   :  { %v4051_v48 = vpop.f32.mrb[4].mxu1 }
 0x11f   :  { %v4053_v53 = vpop.f32.mrb[5].mxu1 }
 0x121   :  { %v4124_v31 = vpop.f32.mrb[0].mxu0 }
 0x122   :  { %v4060_v62 = vpop.f32.mrb[6].mxu1 }
 0x123   :  { %v4063_v5 = vpop.f32.mrb[7].mxu1  ;;  %v441_v1 = vadd.f32 %v4060_v62, %v231_v60 }
 0x125   :  { %v864_v7 = vadd.f32 1.0, %v441_v1 }
 0x126   :  { %v4070_v12 = vpop.f32.mrb[8].mxu1 }
 0x127   :  { %v447_v4 = vadd.f32 %v4070_v12, %v231_v60 }
 0x192   :  { %v838_v16 = vpop.xlane.xlu0 %837 }
 0x193   :  { %v844_v17 = vmul.f32 0.03125, %v838_v16  ;;  %v879_v16 = vld [vmem:[#allocation4 + $0x48] sm:$0xff] }
 0x195   :  { %v4036_v18 = vsub.f32 %v4027_v63, %v844_v17  ;;  %v4073_v17 = vpop.f32.mrb[9].mxu1 }
 0x196   :  { %v842_v19 = vpop.xlane.xlu0 %841  ;;  %v517_v28 = vpop.f32.mrb[10].mxu1 }
 0x197   :  { %v845_v20 = vmul.f32 0.03125, %v842_v19  ;;  %v848_v21 = vmul.f32 %v4036_v18, %v4036_v18  ;;  %v3601_v19 = vpack.c.bf16 %v876_v15, %v870_v14  ;;  %v4081_v35 = vpop.f32.mrb[11].mxu1  ;;  %v518_v8 = vadd.f32 %v517_v28, %v239_v2  ;;  %v893_v14 = vld [vmem:[#allocation4 + $0xb8] sm:$0xff] }
 0x198   :  { %v523_v44 = vpop.f32.mrb[12].mxu1  ;;  %v216_v28 = vld [vmem:[#allocation2 + $0x200] ss:$8 sm:$0x30] }
 0x199   :  { %v4041_v22 = vsub.f32 %v4029_v0, %v845_v20  ;;  %v850_v23 = vsel %vm290_vm1, %v848_v21, 0.0  ;;  %v3607_v20 = vpack.c.bf16 %v879_v16, %v873_v11  ;;  %v872_v21 = vld [vmem:[#allocation4 + $0x10] sm:$0xff]  ;;  %3602 = vmatpush1.bf16.msra.mxu0 %v3601_v19  ;;  %v4089_v46 = vpop.f32.mrb[13].mxu1  ;;  %v865_v19 = vadd.f32 1.0, %v447_v4 }
 0x19a   :  { %851 = vadd.xlane.f32.xlu1 %v850_v23  ;;  %v878_v23 = vld [vmem:[#allocation4 + $0x40] sm:$0xff]  ;;  %v880_v11 = vld [vmem:[#allocation4 + $0x50] sm:$0xff] }
 0x19b   :  { %v849_v24 = vmul.f32 %v4041_v22, %v4041_v22  ;;  %3608 = vmatprep.subr.bf16.mxu1 %v3607_v20  ;;  %v3617_v20 = vpack.c.bf16 %v880_v11, %v874_v9 }
 0x19d   :  { %v853_v25 = vsel %vm839_vm2, %v849_v24, 0.0  ;;  %v3609_v24 = vpack.c.bf16 %v878_v23, %v872_v21  ;;  %v524_v23 = vadd.f32 %v523_v44, %v239_v2  ;;  %v4142_v44 = vsub.s32 5, %v4091_v52 }
 0x19e   :  { %854 = vadd.xlane.f32.xlu1 %v853_v25  ;;  %v883_v25 = vld [vmem:[#allocation4 + $0x68] sm:$0xff] }
 0x19f   :  { %v3603_v29 = vpack.c.bf16 %v889_v26, %v883_v25  ;;  %3610 = vmatpush1.bf16.msra.mxu1 %v3609_v24  ;;  %v3619_v24 = vpack.c.bf16 %v893_v14, %v887_v13  ;;  %v886_v25 = vld [vmem:[#allocation4 + $0x80] sm:$0xff]  ;;  %v892_v26 = vld [vmem:[#allocation4 + $0xb0] sm:$0xff] }
 0x1a0   :  { %3612 = vmatprep.subr.bf16.mxu1 %v3611_v33  ;;  %v4130_v33 = vpop.f32.mrb[14].mxu1  ;;  %v895_v13 = vld [vmem:[#allocation4 + $0xc0] ss:$8 sm:$0xf] }
 0x1a1   :  { %3604 = vmatprep.subr.bf16.mxu0 %v3603_v29  ;;  %v4120_v29 = vsub.s32 1, %v4091_v52  ;;  %v673_v37 = vpop.f32.mrb[15].mxu1  ;;  %v896_v14 = vld [vmem:[#allocation4 + $0xc0] ss:$8 sm:$0x30] }
 0x1a2   :  { %3606 = vmatpush1.bf16.msra.mxu0 %v3605_v36  ;;  %v4128_v36 = vpop.f32.mrb[1].mxu0  ;;  %v4146_v47 = vpop.f32.mrb[16].mxu1 }
 0x1a3   :  { %3614 = vmatpush1.bf16.msra.mxu1 %v3613_v41  ;;  %3616 = vmatprep.subr.bf16.mxu0 %v3615_v45  ;;  %v4135_v41 = vpop.f32.mrb[2].mxu0 }
 0x1a4   :  { %v4139_v43 = vpop.f32.mrb[3].mxu0 }
 0x1dd   :  { %v4150_v51 = vpop.f32.mrb[4].mxu0 }
 0x227   :  { %v852_v49 = vpop.xlane.xlu1 %851 }
 0x228   :  { %v856_v50 = vmul.f32 0.03125, %v852_v49  ;;  %v679_v49 = vpop.f32.mrb[17].mxu1 }
 0x22a   :  { %v858_v54 = vadd.f32 1e-06, %v856_v50 }
 0x22b   :  { %v855_v55 = vpop.xlane.xlu1 %854 }
 0x22c   :  { %3819 = vrsqrt.f32 %v858_v54  ;;  %v857_v57 = vmul.f32 0.03125, %v855_v55  ;;  %v750_v55 = vpop.f32.mrb[5].mxu0 }
 0x22d   :  { %v4160_v2 = vpop.f32.mrb[6].mxu0 }
 0x22e   :  { %v859_v59 = vadd.f32 1e-06, %v857_v57  ;;  %v756_v4 = vpop.f32.mrb[7].mxu0 }
 0x230   :  { %3821 = vrsqrt.f32 %v859_v59  ;;  %v825_v59 = vpop.f32.mrb[18].mxu1 }
 0x231   :  { %v827_v1 = vpop.f32.mrb[19].mxu1 }
 0x236   :  { %v3820_v3 = vpop.eup %3819 }
 0x237   :  { %v862_v6 = vmul.f32 %v3820_v3, %v4036_v18  ;;  %v3621_v18 = vpack.c.bf16 %v892_v26, %v886_v25 }
 0x239   :  { %v866_v15 = vmul.f32 %v864_v7, %v862_v6  ;;  %v831_v7 = vpop.f32.mrb[20].mxu1 }
 0x23a   :  { %v3822_v16 = vpop.eup %3821  ;;  %v833_v9 = vpop.f32.mrb[21].mxu1 }
 0x23b   :  { %v863_v62 = vmul.f32 %v3822_v16, %v4041_v22  ;;  %v868_v21 = vadd.f32 %v866_v15, %v518_v8  ;;  %v215_v22 = vld [vmem:[#allocation2 + $0x200] ss:$8 sm:$0xf]  ;;  %v897_v15 = vor.u32 %v896_v14, %v895_v13  ;;  %v4171_v16 = vsub.s32 0, %v4091_v52 }
 0x23c   :  { %v4122_v30 = vor.u32 %v216_v28, %v215_v22 }
 0x23d   :  { %v867_v12 = vmul.f32 %v865_v19, %v863_v62  ;;  %3192 = vmatmul.mubr.msk.f32.vlgmr.msra.gmra.mrb[8].mxu0 %vm290_vm1, %v868_v21  ;;  %3194 = vmatmul.mubr.msk.f32.vlgmr.msra.gmra.mrb[22].mxu1 %vm290_vm1, %v868_v21  ;;  %v902_v19 = vrot.slane %v897_v15, %v4171_v16  ;;  %v906_v26 = vrot.slane %v897_v15, %v4120_v29 }
 0x23e   :  { %3618 = vmatpush1.bf16.msra.mxu0 %v3617_v20  ;;  %1005 = vmatprep.mubr.f32.mxu0 %v3933_v10  ;;  %v259_v34 = vrot.slane %v4122_v30, %v4120_v29  ;;  %v267_v45 = vrot.slane %v4122_v30, %v4133_v39  ;;  %v271_v50 = vrot.slane %v4122_v30, %v4101_v61 }
 0x23f   :  { %v869_v27 = vadd.f32 %v867_v12, %v524_v23  ;;  %1082 = vmatprep.mubr.f32.mxu1 %v3933_v10  ;;  %3620 = vmatprep.subr.bf16.mxu0 %v3619_v24  ;;  %v275_v40 = vrot.slane %v4122_v30, %v4142_v44  ;;  %v910_v23 = vrot.slane %v897_v15, %v4094_v56 }
 0x240   :  { %v4137_v42 = vadd.f32 %v673_v37, %v259_v34  ;;  %v4152_v54 = vadd.f32 %v679_v49, %v259_v34  ;;  %v4156_v57 = vadd.f32 %v750_v55, %v267_v45  ;;  %v4158_v60 = vadd.f32 %v825_v59, %v271_v50 }
 0x241   :  { %3193 = vmatmul.mubr.msk.f32.gmra.mrb[10].mxu0 %vm290_vm1, %v869_v27  ;;  %3195 = vmatmul.mubr.msk.f32.gmra.mrb[24].mxu1 %vm290_vm1, %v869_v27  ;;  %v4162_v3 = vadd.f32 %v827_v1, %v275_v40  ;;  %v4164_v6 = vadd.f32 %v756_v4, %v267_v45  ;;  %v4166_v8 = vadd.f32 %v831_v7, %v271_v50 }
 0x242   :  { %3622 = vmatpush1.bf16.msra.mxu0 %v3621_v18  ;;  %1153 = vmatprep.mubr.f32.mxu0 %v3933_v10  ;;  %v4168_v11 = vadd.f32 %v833_v9, %v275_v40  ;;  %v918_v1 = vrot.slane %v897_v15, %v4101_v61  ;;  %v922_v7 = vrot.slane %v897_v15, %v4142_v44 }
 0x243   :  { %v914_v13 = vrot.slane %v897_v15, %v4133_v39 }
 0x245   :  { %3196 = vmatmul.mubr.msk.f32.vlgmr.msra.gmra.mrb[12].mxu0 %vm290_vm1, %v868_v21 }
 0x246   :  { %1159 = vmatprep.mubr.f32.mxu0 %v3933_v10 }
 0x249   :  { %3197 = vmatmul.mubr.msk.f32.gmra.mrb[14].mxu0 %vm290_vm1, %v869_v27 }
 0x310   :  { %v1001_v20 = vpop.f32.mrb[8].mxu0  ;;  %v1078_v62 = vpop.f32.mrb[22].mxu1 }
 0x311   :  { %v1002_v21 = vadd.f32 %v1001_v20, %v902_v19  ;;  %v1003_v24 = vpop.f32.mrb[9].mxu0  ;;  %v1080_v25 = vpop.f32.mrb[23].mxu1  ;;  %v1079_v27 = vadd.f32 %v1078_v62, %v910_v23 }
 0x312   :  { %v1004_v37 = vadd.f32 %v1003_v24, %v906_v26 }
 0x313   :  { %3360 = vmatprep.mubr.msk.f32.mxu1 %vm1166_vm3, %v1002_v21 }
 0x314   :  { %v1007_v12 = vpop.f32.mrb[10].mxu0  ;;  %v1084_v18 = vpop.f32.mrb[24].mxu1 }
 0x315   :  { %v1085_v22 = vadd.f32 %v1084_v18, %v910_v23  ;;  %v1009_v28 = vpop.f32.mrb[11].mxu0  ;;  %v1086_v34 = vpop.f32.mrb[25].mxu1 }
 0x316   :  { %v1010_v45 = vadd.f32 %v1009_v28, %v906_v26  ;;  %v1008_v26 = vadd.f32 %v1007_v12, %v902_v19  ;;  %v1087_v15 = vadd.f32 %v1086_v34, %v914_v13  ;;  %v4210_v19 = vld [vmem:[%s4389_s0 + $0x48] sm:$0xf] }
 0x317   :  { %v3629_v50 = vpack.c.bf16 %v1085_v22, %v1079_v27  ;;  %v1081_v27 = vadd.f32 %v1080_v25, %v914_v13  ;;  %v4215_v25 = vld [vmem:[%s4389_s0 + $0x20] sm:$0xff] }
 0x318   :  { %v3623_v55 = vpack.c.bf16 %v1010_v45, %v1004_v37  ;;  %v1155_v59 = vpop.f32.mrb[12].mxu0 }
 0x319   :  { %v1157_v4 = vpop.f32.mrb[13].mxu0  ;;  %3631 = vmatprep.subr.msk.bf16.mxu0 %vm4177_vm6, %v3629_v50  ;;  %v1156_v14 = vadd.f32 %v1155_v59, %v918_v1 }
 0x31a   :  { %3625 = vmatprep.subr.msk.bf16.mxu1 %vm4183_vm7, %v3623_v55  ;;  %3634 = vmatpush3.bf16.msk.msra.mxu0 %vm4177_vm6, %v3629_v50  ;;  %v1158_v21 = vadd.f32 %v1157_v4, %v922_v7 }
 0x31b   :  { %3628 = vmatpush3.bf16.xpose.msk.msra.mxu1 %vm4183_vm7, %v3623_v55 }
 0x31c   :  { %v1161_v9 = vpop.f32.mrb[14].mxu0 }
 0x31d   :  { %v1162_v20 = vadd.f32 %v1161_v9, %v918_v1  ;;  %v1163_v62 = vpop.f32.mrb[15].mxu0 }
 0x31e   :  { %v1164_v23 = vadd.f32 %v1163_v62, %v922_v7 }
 0x31f   :  { %v3635_v24 = vpack.c.bf16 %v1162_v20, %v1156_v14 }
 0x320   :  { %v3641_v18 = vpack.c.bf16 %v1164_v23, %v1158_v21 }
 0x321   :  { %3637 = vmatprep.subr.msk.bf16.mxu1 %vm4183_vm7, %v3635_v24 }
 0x322   :  { %3361 = vmatmul.mubr.msk.f32.vlgmr.msra.gmra.mrb[26].mxu1 %vm1166_vm3, %v1008_v26  ;;  %3643 = vmatprep.subr.msk.bf16.mxu0 %vm4177_vm6, %v3641_v18 }
 0x323   :  { %3640 = vmatpush3.bf16.xpose.msk.msra.mxu1 %vm4183_vm7, %v3635_v24  ;;  %3374 = vmatprep.mubr.msk.f32.mxu1 %vm1166_vm3, %v1081_v27 }
 0x32a   :  { %3375 = vmatmul.mubr.msk.f32.vlgmr.msra.gmra.mrb[28].mxu1 %vm1166_vm3, %v1087_v15 }
 0x3f5   :  { %v3362_v12 = vpop.f32.mrb[26].mxu1 }
 0x3f6   :  { %v1251_v22 = vadd.f32 %v3362_v12, %v4210_v19  ;;  %v1245_v28 = vpop.f32.mrb[27].mxu1 }
 0x3f7   :  { %v1246_v37 = vadd.f32 %v1245_v28, %v4215_v25 }
 0x3f8   :  { %v1256_v45 = vmul.f32 1.442695, %v1251_v22 }
 0x3f9   :  { %v1254_v34 = vmul.f32 1.442695, %v1246_v37 }
 0x3fa   :  { %3823 = vpow2.f32 %v1256_v45 }
 0x3fb   :  { %3825 = vpow2.f32 %v1254_v34 }
 0x3fd   :  { %v3376_v50 = vpop.f32.mrb[28].mxu1 }
 0x3fe   :  { %v1441_v55 = vadd.f32 %v3376_v50, %v4210_v19  ;;  %v1435_v59 = vpop.f32.mrb[29].mxu1 }
 0x3ff   :  { %v1436_v1 = vadd.f32 %v1435_v59, %v4215_v25 }
 0x400   :  { %v1446_v4 = vmul.f32 1.442695, %v1441_v55 }
 0x401   :  { %v1444_v7 = vmul.f32 1.442695, %v1436_v1  ;;  %v1542_v1 = vld [vmem:[#allocation4 + $0x150] sm:$0xff] }
 0x402   :  { %3827 = vpow2.f32 %v1446_v4  ;;  %v1543_v4 = vld [vmem:[#allocation4 + $0x180] sm:$0xff] }
 0x403   :  { %3829 = vpow2.f32 %v1444_v7  ;;  %v3647_v7 = vpack.c.bf16 %v1543_v4, %v1542_v1 }
 0x404   :  { %v3824_v9 = vpop.eup %3823 }
 0x405   :  { %v3826_v13 = vpop.eup %3825  ;;  %v1263_v14 = vsel %vm1262_vm8, %v3824_v9, 0.0 }
 0x406   :  { %1264 = vadd.xlane.f32.xlu1 %v1263_v14  ;;  %v1259_v20 = vsel %vm1258_vm9, %v3826_v13, 0.0 }
 0x407   :  { %1260 = vadd.xlane.f32.xlu0 %v1259_v20 }
 0x40c   :  { %v3828_v62 = vpop.eup %3827 }
 0x40d   :  { %v3830_v21 = vpop.eup %3829  ;;  %v1451_v23 = vsel %vm1262_vm8, %v3828_v62, 0.0 }
 0x40e   :  { %1452 = vadd.xlane.f32.xlu1 %v1451_v23  ;;  %v1448_v24 = vsel %vm1258_vm9, %v3830_v21, 0.0 }
 0x40f   :  { %1449 = vadd.xlane.f32.xlu0 %v1448_v24 }
 0x493   :  { %v1265_v26 = vpop.xlane.xlu1 %1264 }
 0x494   :  { %3831 = vrcp.f32 %v1265_v26  ;;  %v1261_v27 = vpop.xlane.xlu0 %1260 }
 0x495   :  { %3833 = vrcp.f32 %v1261_v27 }
 0x49b   :  { %v1453_v15 = vpop.xlane.xlu1 %1452 }
 0x49c   :  { %3835 = vrcp.f32 %v1453_v15  ;;  %v1450_v12 = vpop.xlane.xlu0 %1449 }
 0x49d   :  { %3837 = vrcp.f32 %v1450_v12 }
 0x49e   :  { %v3832_v22 = vpop.eup %3831 }
 0x49f   :  { %v3834_v28 = vpop.eup %3833  ;;  %v1269_v45 = vmul.f32 %v3832_v22, %v3824_v9  ;;  %v1355_v9 = vld [vmem:[#allocation4 + $0xf0] sm:$0xff] }
 0x4a0   :  { %v1268_v37 = vmul.f32 %v3834_v28, %v3826_v13  ;;  %v1356_v13 = vld [vmem:[#allocation4 + $0x120] sm:$0xff] }
 0x4a1   :  { %v3651_v14 = vpack.c.bf16 %v1356_v13, %v1355_v9 }
 0x4a2   :  { %3367 = vmatprep.mubr.msk.f32.mxu0 %vm1258_vm9, %v1268_v37 }
 0x4a3   :  { %3368 = vmatmul.mubr.msk.f32.vlgmr.msra.gmra.mrb[16].mxu0 %vm1258_vm9, %v1269_v45 }
 0x4a4   :  { %3646 = vmatpush3.bf16.msk.msra.mxu0 %vm4177_vm6, %v3641_v18 }
 0x4a5   :  { %3648 = vmatprep.subr.bf16.mxu0 %v3647_v7 }
 0x4a6   :  { %v3836_v34 = vpop.eup %3835 }
 0x4a7   :  { %v3838_v50 = vpop.eup %3837  ;;  %v1457_v59 = vmul.f32 %v3836_v34, %v3828_v62  ;;  %v223_v62 = vrot.slane %v4096_v58, %v4171_v16 }
 0x4a8   :  { %v1456_v55 = vmul.f32 %v3838_v50, %v3830_v21  ;;  %v1706_v21 = vld [vmem:[#allocation4 + $0x1b0] ss:$0 sm:$0xff] }
 0x4a9   :  { %v370_v27 = vadd.f32 %v4051_v48, %v223_v62  ;;  %v364_v22 = vadd.f32 %v4047_v32, %v223_v62  ;;  %v1748_v62 = vld [vmem:[#allocation4 + $0x270] sm:$0xff] }
 0x4aa   :  { %3381 = vmatprep.mubr.msk.f32.mxu0 %vm1258_vm9, %v1456_v55 }
 0x4ab   :  { %3382 = vmatmul.mubr.msk.f32.vlgmr.msra.gmra.mrb[18].mxu0 %vm1258_vm9, %v1457_v59 }
 0x4ac   :  { %3650 = vmatpush3.bf16.msra.mxu0 %v3647_v7 }
 0x4ad   :  { %3652 = vmatprep.subr.bf16.mxu0 %v3651_v14 }
 0x576   :  { %v3369_v20 = vpop.f32.mrb[16].mxu0 }
 0x577   :  { %v1346_v23 = vpop.f32.mrb[17].mxu0 }
 0x57e   :  { %v3383_v18 = vpop.f32.mrb[18].mxu0 }
 0x57f   :  { %v1533_v24 = vpop.f32.mrb[19].mxu0 }
 0x580   :  { %3388 = vmatprep.mubr.msk.f32.mxu0 %vm1166_vm3, %v1533_v24  ;;  %v1747_v24 = vld [vmem:[#allocation4 + $0x240] sm:$0xff] }
 0x581   :  { %3389 = vmatmul.mubr.msk.f32.vlgmr.msra.gmra.mrb[20].mxu0 %vm1166_vm3, %v3383_v18 }
 0x582   :  { %3654 = vmatpush3.bf16.msra.mxu0 %v3651_v14  ;;  %3395 = vmatprep.mubr.msk.f32.mxu0 %vm1166_vm3, %v1346_v23  ;;  %v1746_v23 = vld [vmem:[#allocation4 + $0x210] sm:$0xff] }
 0x589   :  { %3396 = vmatmul.mubr.msk.f32.vlgmr.msra.gmra.mrb[20].mxu0 %vm1166_vm3, %v3369_v20  ;;  %v1745_v20 = vld [vmem:[#allocation4 + $0x1e0] sm:$0xff] }
 0x58a   :  { %v3655_v18 = vpack.c.bf16 %v1746_v23, %v1745_v20 }
 0x58c   :  { %3656 = vmatprep.subr.bf16.mxu1 %v3655_v18 }
 0x58d   :  { %3658 = vmatpush3.bf16.msra.mxu1 %v3655_v18 }
 0x65c   :  { %v3397_v26 = vpop.f32.mrb[20].mxu0 }
 0x65d   :  { %v1708_v15 = vadd.f32 %v3397_v26, %v1706_v21  ;;  %v1697_v12 = vpop.f32.mrb[21].mxu0 }
 0x65e   :  { %v1707_v28 = vadd.f32 %v1706_v21, %v1697_v12  ;;  %v3659_v21 = vpack.c.bf16 %v1748_v62, %v1747_v24 }
 0x65f   :  { %v1710_v37 = vmul.f32 %v1708_v15, %v370_v27 }
 0x660   :  { %v1709_v45 = vmul.f32 %v1707_v28, %v364_v22  ;;  %3660 = vmatprep.subr.bf16.mxu1 %v3659_v21 }
 0x661   :  { %v4240_v34 = vadd.f32 %v1710_v37, %v4029_v0  ;;  %3662 = vmatpush3.bf16.msra.mxu1 %v3659_v21  ;;  %v235_v37 = vrot.slane %v4096_v58, %v4133_v39  ;;  %v1854_v21 = vld [vmem:[#allocation4 + $0x3c0] sm:$0xff] }
 0x662   :  { %v4243_v50 = vadd.f32 %v1709_v45, %v4027_v63 }
 0x663   :  { %v1716_v55 = vsel %vm839_vm2, %v4240_v34, 0.0  ;;  %v449_v45 = vadd.f32 %v4073_v17, %v235_v37  ;;  %v1850_v17 = vld [vmem:[#allocation4 + $0x300] sm:$0xff] }
 0x664   :  { %1717 = vadd.xlane.f32.xlu1 %v1716_v55  ;;  %v1713_v48 = vsel %vm290_vm1, %v4243_v50, 0.0  ;;  %v443_v55 = vadd.f32 %v4063_v5, %v235_v37  ;;  %v1849_v5 = vld [vmem:[#allocation4 + $0x2d0] sm:$0xff] }
 0x665   :  { %1714 = vadd.xlane.f32.xlu0 %v1713_v48  ;;  %v3663_v62 = vpack.c.bf16 %v1850_v17, %v1849_v5  ;;  %v1859_v37 = vld [vmem:[#allocation4 + $0x4b0] sm:$0xff] }
 0x667   :  { %3664 = vmatprep.subr.bf16.mxu0 %v3663_v62 }
 0x668   :  { %3666 = vmatpush3.bf16.msra.mxu0 %v3663_v62 }
 0x6f1   :  { %v1718_v59 = vpop.xlane.xlu1 %1717 }
 0x6f2   :  { %v1720_v1 = vmul.f32 0.03125, %v1718_v59  ;;  %v1715_v32 = vpop.xlane.xlu0 %1714  ;;  %v243_v59 = vrot.slane %v4096_v58, %v4142_v44 }
 0x6f3   :  { %v1719_v4 = vmul.f32 0.03125, %v1715_v32  ;;  %v1740_v32 = vadd.f32 1.0, %v449_v45 }
 0x6f4   :  { %v1722_v7 = vsub.f32 %v4240_v34, %v1720_v1  ;;  %v520_v20 = vadd.f32 %v4081_v35, %v243_v59  ;;  %v1853_v35 = vld [vmem:[#allocation4 + $0x390] sm:$0xff] }
 0x6f5   :  { %v1721_v0 = vsub.f32 %v4243_v50, %v1719_v4 }
 0x6f6   :  { %v1724_v9 = vmul.f32 %v1722_v7, %v1722_v7 }
 0x6f7   :  { %v1723_v13 = vmul.f32 %v1721_v0, %v1721_v0 }
 0x6f8   :  { %v1728_v63 = vsel %vm839_vm2, %v1724_v9, 0.0  ;;  %v1739_v9 = vadd.f32 1.0, %v443_v55  ;;  %v1860_v55 = vld [vmem:[#allocation4 + $0x4e0] sm:$0xff] }
 0x6f9   :  { %1729 = vadd.xlane.f32.xlu1 %v1728_v63  ;;  %v1725_v14 = vsel %vm290_vm1, %v1723_v13, 0.0  ;;  %v526_v63 = vadd.f32 %v4089_v46, %v243_v59  ;;  %v1861_v59 = vld [vmem:[#allocation4 + $0x510] sm:$0xff] }
 0x6fa   :  { %1726 = vadd.xlane.f32.xlu0 %v1725_v14 }
 0x786   :  { %v1730_v26 = vpop.xlane.xlu1 %1729 }
 0x787   :  { %v1732_v27 = vmul.f32 0.03125, %v1730_v26  ;;  %v1727_v15 = vpop.xlane.xlu0 %1726  ;;  %v3671_v26 = vpack.c.bf16 %v1854_v21, %v1853_v35 }
 0x788   :  { %v1731_v12 = vmul.f32 0.03125, %v1727_v15  ;;  %v1856_v15 = vld [vmem:[#allocation4 + $0x420] sm:$0xff] }
 0x789   :  { %v1734_v22 = vadd.f32 1e-06, %v1732_v27  ;;  %v1855_v27 = vld [vmem:[#allocation4 + $0x3f0] sm:$0xff] }
 0x78a   :  { %v1733_v28 = vadd.f32 1e-06, %v1731_v12  ;;  %v3675_v12 = vpack.c.bf16 %v1856_v15, %v1855_v27 }
 0x78b   :  { %3839 = vrsqrt.f32 %v1734_v22  ;;  %v1857_v22 = vld [vmem:[#allocation4 + $0x450] sm:$0xff] }
 0x78c   :  { %3841 = vrsqrt.f32 %v1733_v28  ;;  %v1858_v28 = vld [vmem:[#allocation4 + $0x480] sm:$0xff] }
 0x78d   :  { %v3679_v45 = vpack.c.bf16 %v1858_v28, %v1857_v22 }
 0x795   :  { %v3840_v48 = vpop.eup %3839 }
 0x796   :  { %v3842_v1 = vpop.eup %3841  ;;  %v1738_v4 = vmul.f32 %v3840_v48, %v1722_v7  ;;  %v1851_v7 = vld [vmem:[#allocation4 + $0x330] sm:$0xff]  ;;  %v3683_v48 = vpack.c.bf16 %v1860_v55, %v1859_v37 }
 0x797   :  { %v1737_v13 = vmul.f32 %v3842_v1, %v1721_v0  ;;  %v1852_v0 = vld [vmem:[#allocation4 + $0x360] sm:$0xff] }
 0x798   :  { %v1742_v14 = vmul.f32 %v1740_v32, %v1738_v4  ;;  %v3667_v46 = vpack.c.bf16 %v1852_v0, %v1851_v7  ;;  %v1862_v1 = vld [vmem:[#allocation4 + $0x540] sm:$0xff]  ;;  %v1863_v4 = vld [vmem:[#allocation4 + $0x570] sm:$0xff] }
 0x799   :  { %v1741_v23 = vmul.f32 %v1739_v9, %v1737_v13  ;;  %v3687_v32 = vpack.c.bf16 %v1862_v1, %v1861_v59  ;;  %v1864_v9 = vld [vmem:[#allocation4 + $0x5a0] sm:$0xff]  ;;  %v1865_v59 = vld [vmem:[#allocation4 + $0x5d0] ss:$0 sm:$0xff] }
 0x79a   :  { %v1744_v18 = vadd.f32 %v1742_v14, %v526_v63  ;;  %3668 = vmatprep.subr.bf16.mxu0 %v3667_v46  ;;  %v3691_v13 = vpack.c.bf16 %v1864_v9, %v1863_v4  ;;  %v1749_v63 = vld [vmem:[#allocation4 + $0x2a0] ss:$0 sm:$0xff] }
 0x79b   :  { %v1743_v24 = vadd.f32 %v1741_v23, %v520_v20  ;;  %3670 = vmatpush3.bf16.msra.mxu0 %v3667_v46 }
 0x79c   :  { %3672 = vmatprep.subr.bf16.mxu0 %v3671_v26 }
 0x79d   :  { %3406 = vmatprep.mubr.msk.f32.mxu1 %vm290_vm1, %v1743_v24 }
 0x79e   :  { %3407 = vmatmul.mubr.msk.f32.vlgmr.msra.gmra.mrb[30].mxu1 %vm290_vm1, %v1744_v18 }
 0x79f   :  { %2106 = vmatprep.mubr.f32.mxu1 %v3933_v10  ;;  %3674 = vmatpush3.bf16.msra.mxu0 %v3671_v26 }
 0x7a0   :  { %3676 = vmatprep.subr.bf16.mxu0 %v3675_v12 }
 0x7a3   :  { %3678 = vmatpush3.bf16.msra.mxu0 %v3675_v12 }
 0x7a4   :  { %3680 = vmatprep.subr.bf16.mxu0 %v3679_v45 }
 0x7a7   :  { %3682 = vmatpush3.bf16.msra.mxu0 %v3679_v45 }
 0x7a8   :  { %3684 = vmatprep.subr.bf16.mxu0 %v3683_v48 }
 0x7ab   :  { %3686 = vmatpush3.bf16.msra.mxu0 %v3683_v48  ;;  %v227_v48 = vrot.slane %v4096_v58, %v4120_v29 }
 0x7ac   :  { %3688 = vmatprep.subr.bf16.mxu0 %v3687_v32 }
 0x7af   :  { %3690 = vmatpush3.bf16.msra.mxu0 %v3687_v32  ;;  %v372_v32 = vadd.f32 %v4053_v53, %v227_v48 }
 0x7b0   :  { %3692 = vmatprep.subr.bf16.mxu0 %v3691_v13 }
 0x7b3   :  { %3694 = vmatpush3.bf16.msra.mxu0 %v3691_v13  ;;  %v366_v13 = vadd.f32 %v4049_v38, %v227_v48  ;;  %v1995_v48 = vld [vmem:[#allocation4 + $0x690] sm:$0xff] }
 0x871   :  { %v3408_v14 = vpop.f32.mrb[30].mxu1 }
 0x872   :  { %v1828_v20 = vadd.f32 %v3408_v14, %v1749_v63  ;;  %v1822_v23 = vpop.f32.mrb[31].mxu1 }
 0x873   :  { %v1823_v18 = vadd.f32 %v1822_v23, %v1749_v63 }
 0x874   :  { %v1832_v24 = vmul.f32 %v1828_v20, %v1828_v20 }
 0x875   :  { %v1831_v5 = vmul.f32 %v1823_v18, %v1823_v18 }
 0x876   :  { %v1834_v17 = vmul.f32 %v1832_v24, %v1828_v20 }
 0x877   :  { %v1833_v62 = vmul.f32 %v1831_v5, %v1823_v18 }
 0x878   :  { %v1836_v7 = vmul.f32 0.044715, %v1834_v17 }
 0x879   :  { %v1835_v0 = vmul.f32 0.044715, %v1833_v62 }
 0x87a   :  { %v1838_v46 = vadd.f32 %v1836_v7, %v1828_v20 }
 0x87b   :  { %v1837_v35 = vadd.f32 %v1835_v0, %v1823_v18 }
 0x87c   :  { %v1840_v21 = vmul.f32 0.7978846, %v1838_v46 }
 0x87d   :  { %v1839_v26 = vmul.f32 0.7978846, %v1837_v35 }
 0x87e   :  { %3843 = vtanh.f32 %v1840_v21  ;;  %v1978_v21 = vld [vmem:[#allocation4 + $0x608] sm:$0xff] }
 0x87f   :  { %3845 = vtanh.f32 %v1839_v26  ;;  %v1984_v26 = vld [vmem:[#allocation4 + $0x638] sm:$0xff] }
 0x888   :  { %v3844_v27 = vpop.eup %3843 }
 0x889   :  { %v3846_v15 = vpop.eup %3845  ;;  %v1844_v12 = vadd.f32 1.0, %v3844_v27  ;;  %v3695_v27 = vpack.c.bf16 %v1984_v26, %v1978_v21  ;;  %v1979_v26 = vld [vmem:[#allocation4 + $0x610] sm:$0xff] }
 0x88a   :  { %v1843_v22 = vadd.f32 1.0, %v3846_v15  ;;  %v1977_v15 = vld [vmem:[#allocation4 + $0x600] sm:$0xff] }
 0x88b   :  { %v1846_v28 = vmul.f32 0.5, %v1844_v12  ;;  %v1983_v12 = vld [vmem:[#allocation4 + $0x630] sm:$0xff]  ;;  %3696 = vmatprep.subr.bf16.mxu1 %v3695_v27  ;;  %v1985_v27 = vld [vmem:[#allocation4 + $0x640] sm:$0xff] }
 0x88c   :  { %v1845_v37 = vmul.f32 0.5, %v1843_v22  ;;  %v3697_v22 = vpack.c.bf16 %v1983_v12, %v1977_v15  ;;  %v1992_v12 = vld [vmem:[#allocation4 + $0x678] sm:$0xff] }
 0x88d   :  { %v1848_v55 = vmul.f32 %v1846_v28, %v1828_v20  ;;  %v1990_v28 = vld [vmem:[#allocation4 + $0x668] sm:$0xff] }
 0x88e   :  { %v1847_v45 = vmul.f32 %v1845_v37, %v1823_v18  ;;  %3698 = vmatpush1.bf16.msra.mxu1 %v3697_v22  ;;  %v1996_v37 = vld [vmem:[#allocation4 + $0x698] sm:$0xff]  ;;  %v1998_v22 = vld [vmem:[#allocation4 + $0x6a8] sm:$0xff] }
 0x890   :  { %3441 = vmatprep.mubr.f32.mxu0 %v1847_v45  ;;  %v1989_v45 = vld [vmem:[#allocation4 + $0x660] sm:$0xff] }
 0x891   :  { %3442 = vmatmul.mubr.f32.vlgmr.msra.gmra.mrb[22].mxu0 %v1848_v55  ;;  %v3699_v55 = vpack.c.bf16 %v1996_v37, %v1990_v28 }
 0x893   :  { %3700 = vmatprep.subr.bf16.mxu1 %v3699_v55 }
 0x964   :  { %v3443_v1 = vpop.f32.mrb[22].mxu0 }
 0x965   :  { %v1938_v4 = vadd.f32 %v3443_v1, %v1865_v59  ;;  %v1932_v9 = vpop.f32.mrb[23].mxu0  ;;  %v1986_v1 = vld [vmem:[#allocation4 + $0x648] sm:$0xff] }
 0x966   :  { %v1933_v63 = vadd.f32 %v1932_v9, %v1865_v59  ;;  %v1980_v59 = vld [vmem:[#allocation4 + $0x618] sm:$0xff] }
 0x967   :  { %v1942_v14 = vmul.f32 %v1938_v4, %v372_v32  ;;  %v3701_v32 = vpack.c.bf16 %v1995_v48, %v1989_v45  ;;  %v3703_v4 = vpack.c.bf16 %v1986_v1, %v1980_v59  ;;  %v3707_v48 = vpack.c.bf16 %v1998_v22, %v1992_v12  ;;  %v1997_v59 = vld [vmem:[#allocation4 + $0x6a0] sm:$0xff]  ;;  %v1982_v1 = vld [vmem:[#allocation4 + $0x628] sm:$0xff] }
 0x968   :  { %v1941_v23 = vmul.f32 %v1933_v63, %v366_v13 }
 0x969   :  { %v4269_v24 = vadd.f32 %v1942_v14, %v4240_v34  ;;  %3702 = vmatpush1.bf16.msra.mxu1 %v3701_v32  ;;  %v1981_v32 = vld [vmem:[#allocation4 + $0x620] sm:$0xff] }
 0x96a   :  { %v4272_v20 = vadd.f32 %v1941_v23, %v4243_v50  ;;  %3704 = vmatprep.subr.bf16.mxu1 %v3703_v4  ;;  %v1987_v4 = vld [vmem:[#allocation4 + $0x650] sm:$0xff] }
 0x96b   :  { %v1948_v18 = vsel %vm839_vm2, %v4269_v24, 0.0 }
 0x96c   :  { %1949 = vadd.xlane.f32.xlu1 %v1948_v18  ;;  %v1945_v53 = vsel %vm290_vm1, %v4272_v20, 0.0 }
 0x96d   :  { %1946 = vadd.xlane.f32.xlu0 %v1945_v53  ;;  %v255_v53 = vrot.slane %v4122_v30, %v4171_v16 }
 0x9f9   :  { %v1950_v5 = vpop.xlane.xlu1 %1949 }
 0x9fa   :  { %v1952_v17 = vmul.f32 0.03125, %v1950_v5  ;;  %v1947_v38 = vpop.xlane.xlu0 %1946  ;;  %v678_v5 = vadd.f32 %v4146_v47, %v255_v53 }
 0x9fb   :  { %v1951_v62 = vmul.f32 0.03125, %v1947_v38 }
 0x9fc   :  { %v1954_v7 = vsub.f32 %v4269_v24, %v1952_v17  ;;  %v672_v17 = vadd.f32 %v4130_v33, %v255_v53  ;;  %v3705_v33 = vpack.c.bf16 %v1985_v27, %v1979_v26  ;;  %v2002_v53 = vld [vmem:[#allocation4 + $0x6c0] ss:$8 sm:$0xf] }
 0x9fd   :  { %v1953_v34 = vsub.f32 %v4272_v20, %v1951_v62  ;;  %v263_v62 = vrot.slane %v4122_v30, %v4094_v56  ;;  %v1991_v30 = vld [vmem:[#allocation4 + $0x670] sm:$0xff] }
 0x9fe   :  { %v1956_v0 = vmul.f32 %v1954_v7, %v1954_v7 }
 0x9ff   :  { %v1955_v46 = vmul.f32 %v1953_v34, %v1953_v34  ;;  %v755_v15 = vadd.f32 %v4160_v2, %v263_v62  ;;  %v749_v47 = vadd.f32 %v4150_v51, %v263_v62  ;;  %v3709_v2 = vpack.c.bf16 %v1997_v59, %v1991_v30  ;;  %v1994_v51 = vld [vmem:[#allocation4 + $0x688] sm:$0xff] }
 0xa00   :  { %v1960_v50 = vsel %vm839_vm2, %v1956_v0, 0.0 }
 0xa01   :  { %1961 = vadd.xlane.f32.xlu1 %v1960_v50  ;;  %v1957_v35 = vsel %vm290_vm1, %v1955_v46, 0.0  ;;  %v1972_v46 = vadd.f32 1.0, %v678_v5  ;;  %v2003_v5 = vld [vmem:[#allocation4 + $0x6c0] ss:$8 sm:$0x30] }
 0xa02   :  { %1958 = vadd.xlane.f32.xlu0 %v1957_v35  ;;  %v1971_v35 = vadd.f32 1.0, %v672_v17  ;;  %v2004_v17 = vor.u32 %v2003_v5, %v2002_v53 }
 0xa04   :  { %v2017_v12 = vrot.slane %v2004_v17, %v4094_v56  ;;  %v2025_v30 = vrot.slane %v2004_v17, %v4101_v61  ;;  %v2029_v59 = vrot.slane %v2004_v17, %v4142_v44 }
 0xa8e   :  { %v1962_v9 = vpop.xlane.xlu1 %1961 }
 0xa8f   :  { %v1964_v13 = vmul.f32 0.03125, %v1962_v9  ;;  %v1959_v63 = vpop.xlane.xlu0 %1958  ;;  %v2000_v9 = vld [vmem:[#allocation4 + $0x6b8] sm:$0xff] }
 0xa90   :  { %v1963_v14 = vmul.f32 0.03125, %v1959_v63  ;;  %v3715_v63 = vpack.c.bf16 %v2000_v9, %v1994_v51 }
 0xa91   :  { %v1966_v23 = vadd.f32 1e-06, %v1964_v13  ;;  %v3713_v13 = vpack.c.bf16 %v1987_v4, %v1981_v32 }
 0xa92   :  { %v1965_v18 = vadd.f32 1e-06, %v1963_v14  ;;  %v1993_v14 = vld [vmem:[#allocation4 + $0x680] sm:$0xff] }
 0xa93   :  { %3847 = vrsqrt.f32 %v1966_v23  ;;  %v1999_v23 = vld [vmem:[#allocation4 + $0x6b0] sm:$0xff] }
 0xa94   :  { %3849 = vrsqrt.f32 %v1965_v18  ;;  %v3717_v18 = vpack.c.bf16 %v1999_v23, %v1993_v14 }
 0xa9d   :  { %v3848_v38 = vpop.eup %3847 }
 0xa9e   :  { %v3850_v0 = vpop.eup %3849  ;;  %v1970_v50 = vmul.f32 %v3848_v38, %v1954_v7  ;;  %v1988_v7 = vld [vmem:[#allocation4 + $0x658] sm:$0xff]  ;;  %v2009_v38 = vrot.slane %v2004_v17, %v4171_v16 }
 0xa9f   :  { %v1969_v21 = vmul.f32 %v3850_v0, %v1953_v34  ;;  %v3711_v34 = vpack.c.bf16 %v1988_v7, %v1982_v1 }
 0xaa0   :  { %v1974_v28 = vmul.f32 %v1972_v46, %v1970_v50  ;;  %v2013_v50 = vrot.slane %v2004_v17, %v4120_v29  ;;  %v2021_v29 = vrot.slane %v2004_v17, %v4133_v39 }
 0xaa1   :  { %v1973_v37 = vmul.f32 %v1971_v35, %v1969_v21 }
 0xaa2   :  { %v1976_v45 = vadd.f32 %v1974_v28, %v755_v15 }
 0xaa3   :  { %v1975_v55 = vadd.f32 %v1973_v37, %v749_v47 }
 0xaa5   :  { %3218 = vmatmul.mubr.msk.f32.vlgmr.msra.gmra.mrb[32].mxu1 %vm290_vm1, %v1975_v55 }
 0xaa6   :  { %3706 = vmatpush1.bf16.msra.mxu1 %v3705_v33  ;;  %2112 = vmatprep.mubr.f32.mxu1 %v3933_v10 }
 0xaa7   :  { %3708 = vmatprep.subr.bf16.mxu1 %v3707_v48 }
 0xaa9   :  { %3219 = vmatmul.mubr.msk.f32.gmra.mrb[34].mxu1 %vm290_vm1, %v1976_v45 }
 0xaaa   :  { %3710 = vmatpush1.bf16.msra.mxu1 %v3709_v2  ;;  %2183 = vmatprep.mubr.f32.mxu1 %v3933_v10 }
 0xaab   :  { %3712 = vmatprep.subr.bf16.mxu1 %v3711_v34 }
 0xaad   :  { %3220 = vmatmul.mubr.msk.f32.vlgmr.msra.gmra.mrb[36].mxu1 %vm290_vm1, %v1975_v55 }
 0xaae   :  { %3714 = vmatpush1.bf16.msra.mxu1 %v3713_v13  ;;  %2189 = vmatprep.mubr.f32.mxu1 %v3933_v10 }
 0xaaf   :  { %3716 = vmatprep.subr.bf16.mxu1 %v3715_v63 }
 0xab1   :  { %3221 = vmatmul.mubr.msk.f32.gmra.mrb[38].mxu1 %vm290_vm1, %v1976_v45 }
 0xab2   :  { %3718 = vmatpush1.bf16.msra.mxu1 %v3717_v18  ;;  %2260 = vmatprep.mubr.f32.mxu1 %v3933_v10 }
 0xab5   :  { %3222 = vmatmul.mubr.msk.f32.vlgmr.msra.gmra.mrb[40].mxu1 %vm290_vm1, %v1975_v55 }
 0xab6   :  { %2266 = vmatprep.mubr.f32.mxu1 %v3933_v10 }
 0xab9   :  { %3223 = vmatmul.mubr.msk.f32.gmra.mrb[42].mxu1 %vm290_vm1, %v1976_v45 }
 0xb78   :  { %v2108_v62 = vpop.f32.mrb[32].mxu1 }
 0xb79   :  { %v2109_v0 = vadd.f32 %v2108_v62, %v2009_v38  ;;  %v2110_v46 = vpop.f32.mrb[33].mxu1 }
 0xb7a   :  { %v2111_v26 = vadd.f32 %v2110_v46, %v2013_v50 }
 0xb7b   :  { %3448 = vmatprep.mubr.msk.f32.mxu1 %vm1166_vm3, %v2109_v0 }
 0xb7c   :  { %v2114_v35 = vpop.f32.mrb[34].mxu1 }
 0xb7d   :  { %v2116_v21 = vpop.f32.mrb[35].mxu1  ;;  %v2115_v45 = vadd.f32 %v2114_v35, %v2009_v38 }
 0xb7e   :  { %v2117_v27 = vadd.f32 %v2116_v21, %v2013_v50 }
 0xb80   :  { %v3719_v15 = vpack.c.bf16 %v2117_v27, %v2111_v26  ;;  %v2185_v10 = vpop.f32.mrb[36].mxu1 }
 0xb81   :  { %v2187_v22 = vpop.f32.mrb[37].mxu1  ;;  %v2186_v28 = vadd.f32 %v2185_v10, %v2017_v12 }
 0xb82   :  { %3721 = vmatprep.subr.msk.bf16.mxu1 %vm4183_vm7, %v3719_v15  ;;  %v2188_v48 = vadd.f32 %v2187_v22, %v2021_v29 }
 0xb83   :  { %3724 = vmatpush3.bf16.xpose.msk.msra.mxu1 %vm4183_vm7, %v3719_v15 }
 0xb84   :  { %v2191_v16 = vpop.f32.mrb[38].mxu1 }
 0xb85   :  { %v2192_v47 = vadd.f32 %v2191_v16, %v2017_v12  ;;  %v2193_v37 = vpop.f32.mrb[39].mxu1 }
 0xb86   :  { %v2194_v44 = vadd.f32 %v2193_v37, %v2021_v29 }
 0xb87   :  { %v3725_v33 = vpack.c.bf16 %v2192_v47, %v2186_v28 }
 0xb88   :  { %v2262_v55 = vpop.f32.mrb[40].mxu1 }
 0xb89   :  { %v2264_v56 = vpop.f32.mrb[41].mxu1  ;;  %3727 = vmatprep.subr.msk.bf16.mxu0 %vm4177_vm6, %v3725_v33  ;;  %v2263_v1 = vadd.f32 %v2262_v55, %v2025_v30  ;;  %v2646_v55 = vld [vmem:[#allocation4 + $0x780] sm:$0xff] }
 0xb8a   :  { %3449 = vmatmul.mubr.msk.f32.vlgmr.msra.gmra.mrb[44].mxu1 %vm1166_vm3, %v2115_v45  ;;  %3730 = vmatpush3.bf16.msk.msra.mxu0 %vm4177_vm6, %v3725_v33  ;;  %v2265_v34 = vadd.f32 %v2264_v56, %v2029_v59  ;;  %v2645_v45 = vld [vmem:[#allocation4 + $0x750] sm:$0xff]  ;;  %v2459_v56 = vld [vmem:[#allocation4 + $0x720] sm:$0xff] }
 0xb8b   :  { %3462 = vmatprep.mubr.msk.f32.mxu1 %vm1166_vm3, %v2188_v48  ;;  %v3743_v48 = vpack.c.bf16 %v2646_v55, %v2645_v45 }
 0xb8c   :  { %v2268_v39 = vpop.f32.mrb[42].mxu1 }
 0xb8d   :  { %v2269_v7 = vadd.f32 %v2268_v39, %v2025_v30  ;;  %v2270_v2 = vpop.f32.mrb[43].mxu1  ;;  %v2458_v30 = vld [vmem:[#allocation4 + $0x6f0] sm:$0xff] }
 0xb8e   :  { %v2271_v32 = vadd.f32 %v2270_v2, %v2029_v59  ;;  %v3747_v59 = vpack.c.bf16 %v2459_v56, %v2458_v30  ;;  %v246_v2 = vsub.s32 6, %v4091_v52 }
 0xb8f   :  { %v3731_v61 = vpack.c.bf16 %v2269_v7, %v2263_v1 }
 0xb90   :  { %v3737_v4 = vpack.c.bf16 %v2271_v32, %v2265_v34  ;;  %v247_v34 = vrot.slane %v4096_v58, %v246_v2  ;;  %v2809_v32 = vld [vmem:[#allocation4 + $0x7b0] ss:$0 sm:$0xff]  ;;  %v2957_v2 = vld [vmem:[#allocation4 + $0x9c0] sm:$0xff] }
 0xb91   :  { %3733 = vmatprep.subr.msk.bf16.mxu1 %vm4183_vm7, %v3731_v61 }
 0xb92   :  { %3736 = vmatpush3.bf16.xpose.msk.msra.mxu1 %vm4183_vm7, %v3731_v61  ;;  %3739 = vmatprep.subr.msk.bf16.mxu0 %vm4177_vm6, %v3737_v4 }
 0xb99   :  { %3463 = vmatmul.mubr.msk.f32.vlgmr.msra.gmra.mrb[46].mxu1 %vm1166_vm3, %v2194_v44 }
 0xc5d   :  { %v3450_v51 = vpop.f32.mrb[44].mxu1 }
 0xc5e   :  { %v2357_v9 = vadd.f32 %v3450_v51, %v4210_v19  ;;  %v2351_v13 = vpop.f32.mrb[45].mxu1 }
 0xc5f   :  { %v2352_v63 = vadd.f32 %v2351_v13, %v4215_v25 }
 0xc60   :  { %v2362_v14 = vmul.f32 1.442695, %v2357_v9  ;;  %v595_v9 = vadd.f32 %v4124_v31, %v247_v34 }
 0xc61   :  { %v2360_v23 = vmul.f32 1.442695, %v2352_v63 }
 0xc62   :  { %3851 = vpow2.f32 %v2362_v14 }
 0xc63   :  { %3853 = vpow2.f32 %v2360_v23 }
 0xc6c   :  { %v3852_v18 = vpop.eup %3851  ;;  %v3464_v53 = vpop.f32.mrb[46].mxu1 }
 0xc6d   :  { %v3854_v40 = vpop.eup %3853  ;;  %v2544_v5 = vadd.f32 %v3464_v53, %v4210_v19  ;;  %v2538_v17 = vpop.f32.mrb[47].mxu1  ;;  %v2367_v38 = vsel %vm1262_vm8, %v3852_v18, 0.0 }
 0xc6e   :  { %v2539_v62 = vadd.f32 %v2538_v17, %v4215_v25  ;;  %2368 = vadd.xlane.f32.xlu1 %v2367_v38  ;;  %v2364_v0 = vsel %vm1258_vm9, %v3854_v40, 0.0 }
 0xc6f   :  { %v2549_v46 = vmul.f32 1.442695, %v2544_v5  ;;  %2365 = vadd.xlane.f32.xlu0 %v2364_v0 }
 0xc70   :  { %v2547_v50 = vmul.f32 1.442695, %v2539_v62 }
 0xc71   :  { %3855 = vpow2.f32 %v2549_v46 }
 0xc72   :  { %3857 = vpow2.f32 %v2547_v50  ;;  %v2848_v50 = vld [vmem:[#allocation4 + $0x7e0] sm:$0xff] }
 0xc7b   :  { %v3856_v35 = vpop.eup %3855 }
 0xc7c   :  { %v3858_v21 = vpop.eup %3857  ;;  %v2554_v26 = vsel %vm1262_vm8, %v3856_v35, 0.0 }
 0xc7d   :  { %2555 = vadd.xlane.f32.xlu1 %v2554_v26  ;;  %v2551_v19 = vsel %vm1258_vm9, %v3858_v21, 0.0  ;;  %v2850_v26 = vld [vmem:[#allocation4 + $0x840] sm:$0xff] }
 0xc7e   :  { %2552 = vadd.xlane.f32.xlu0 %v2551_v19  ;;  %v2851_v19 = vld [vmem:[#allocation4 + $0x870] sm:$0xff] }
 0xcfb   :  { %v2369_v27 = vpop.xlane.xlu1 %2368 }
 0xcfc   :  { %3859 = vrcp.f32 %v2369_v27  ;;  %v2366_v15 = vpop.xlane.xlu0 %2365  ;;  %v3755_v27 = vpack.c.bf16 %v2851_v19, %v2850_v26 }
 0xcfd   :  { %3861 = vrcp.f32 %v2366_v15 }
 0xd06   :  { %v3860_v25 = vpop.eup %3859 }
 0xd07   :  { %v3862_v10 = vpop.eup %3861  ;;  %v2373_v22 = vmul.f32 %v3860_v25, %v3852_v18 }
 0xd08   :  { %v2372_v12 = vmul.f32 %v3862_v10, %v3854_v40 }
 0xd0a   :  { %v2556_v16 = vpop.xlane.xlu1 %2555  ;;  %3455 = vmatprep.mubr.msk.f32.mxu0 %vm1258_vm9, %v2372_v12 }
 0xd0b   :  { %3863 = vrcp.f32 %v2556_v16  ;;  %3456 = vmatmul.mubr.msk.f32.vlgmr.msra.gmra.mrb[24].mxu0 %vm1258_vm9, %v2373_v22  ;;  %v2553_v28 = vpop.xlane.xlu0 %2552 }
 0xd0c   :  { %3742 = vmatpush3.bf16.msk.msra.mxu0 %vm4177_vm6, %v3737_v4  ;;  %3865 = vrcp.f32 %v2553_v28  ;;  %v601_v4 = vadd.f32 %v4135_v41, %v247_v34 }
 0xd0d   :  { %3744 = vmatprep.subr.bf16.mxu0 %v3743_v48 }
 0xd15   :  { %v3864_v29 = vpop.eup %3863 }
 0xd16   :  { %v3866_v47 = vpop.eup %3865  ;;  %v2560_v33 = vmul.f32 %v3864_v29, %v3856_v35  ;;  %v2849_v35 = vld [vmem:[#allocation4 + $0x810] sm:$0xff] }
 0xd17   :  { %v2559_v37 = vmul.f32 %v3866_v47, %v3858_v21  ;;  %v3751_v21 = vpack.c.bf16 %v2849_v35, %v2848_v50  ;;  %v2843_v47 = vadd.f32 1.0, %v4152_v54  ;;  %v2954_v54 = vld [vmem:[#allocation4 + $0x930] sm:$0xff] }
 0xd19   :  { %3469 = vmatprep.mubr.msk.f32.mxu0 %vm1258_vm9, %v2559_v37  ;;  %3752 = vmatprep.subr.bf16.mxu1 %v3751_v21 }
 0xd1a   :  { %3470 = vmatmul.mubr.msk.f32.vlgmr.msra.gmra.mrb[26].mxu0 %vm1258_vm9, %v2560_v33  ;;  %3754 = vmatpush3.bf16.msra.mxu1 %v3751_v21  ;;  %v2842_v33 = vadd.f32 1.0, %v4137_v42  ;;  %v2956_v42 = vld [vmem:[#allocation4 + $0x990] sm:$0xff] }
 0xd1b   :  { %3746 = vmatpush3.bf16.msra.mxu0 %v3743_v48  ;;  %3756 = vmatprep.subr.bf16.mxu1 %v3755_v27  ;;  %v3767_v34 = vpack.c.bf16 %v2957_v2, %v2956_v42 }
 0xd1c   :  { %3748 = vmatprep.subr.bf16.mxu0 %v3747_v59 }
 0xd1e   :  { %3758 = vmatpush3.bf16.msra.mxu1 %v3755_v27 }
 0xdde   :  { %v3457_v49 = vpop.f32.mrb[24].mxu0 }
 0xddf   :  { %v2449_v39 = vpop.f32.mrb[25].mxu0 }
 0xded   :  { %v3471_v1 = vpop.f32.mrb[26].mxu0 }
 0xdee   :  { %v2636_v7 = vpop.f32.mrb[27].mxu0 }
 0xdef   :  { %3476 = vmatprep.mubr.msk.f32.mxu0 %vm1166_vm3, %v2636_v7 }
 0xdf0   :  { %3477 = vmatmul.mubr.msk.f32.vlgmr.msra.gmra.mrb[28].mxu0 %vm1166_vm3, %v3471_v1  ;;  %v2955_v1 = vld [vmem:[#allocation4 + $0x960] sm:$0xff] }
 0xdf1   :  { %3750 = vmatpush3.bf16.msra.mxu0 %v3747_v59  ;;  %3483 = vmatprep.mubr.msk.f32.mxu0 %vm1166_vm3, %v2449_v39  ;;  %v2952_v59 = vld [vmem:[#allocation4 + $0x8d0] sm:$0xff]  ;;  %v3763_v7 = vpack.c.bf16 %v2955_v1, %v2954_v54 }
 0xdf8   :  { %3484 = vmatmul.mubr.msk.f32.vlgmr.msra.gmra.mrb[28].mxu0 %vm1166_vm3, %v3457_v49  ;;  %v2953_v49 = vld [vmem:[#allocation4 + $0x900] sm:$0xff] }
 0xdf9   :  { %v3759_v39 = vpack.c.bf16 %v2953_v49, %v2952_v59 }
 0xdfb   :  { %3760 = vmatprep.subr.bf16.mxu0 %v3759_v39 }
 0xdfc   :  { %3762 = vmatpush3.bf16.msra.mxu0 %v3759_v39 }
 0xdfd   :  { %3764 = vmatprep.subr.bf16.mxu0 %v3763_v7 }
 0xe00   :  { %3766 = vmatpush3.bf16.msra.mxu0 %v3763_v7 }
 0xe01   :  { %3768 = vmatprep.subr.bf16.mxu0 %v3767_v34 }
 0xe04   :  { %3770 = vmatpush3.bf16.msra.mxu0 %v3767_v34 }
 0xecb   :  { %v3485_v61 = vpop.f32.mrb[28].mxu0 }
 0xecc   :  { %v2811_v44 = vadd.f32 %v3485_v61, %v2809_v32  ;;  %v2800_v51 = vpop.f32.mrb[29].mxu0  ;;  %v2960_v61 = vld [vmem:[#allocation4 + $0xa50] sm:$0xff] }
 0xecd   :  { %v2810_v13 = vadd.f32 %v2809_v32, %v2800_v51 }
 0xece   :  { %v2813_v63 = vmul.f32 %v2811_v44, %v601_v4  ;;  %v2961_v4 = vld [vmem:[#allocation4 + $0xa80] sm:$0xff]  ;;  %v2962_v44 = vld [vmem:[#allocation4 + $0xab0] sm:$0xff] }
 0xecf   :  { %v2812_v14 = vmul.f32 %v2810_v13, %v595_v9  ;;  %v3775_v51 = vpack.c.bf16 %v2961_v4, %v2960_v61  ;;  %v2963_v9 = vld [vmem:[#allocation4 + $0xae0] sm:$0xff]  ;;  %v3081_v4 = vld [vmem:[#allocation4 + $0xc90] sm:$0xff] }
 0xed0   :  { %v4348_v23 = vadd.f32 %v2813_v63, %v4269_v24  ;;  %v3779_v13 = vpack.c.bf16 %v2963_v9, %v2962_v44  ;;  %v2964_v63 = vld [vmem:[#allocation4 + $0xb10] sm:$0xff] }
 0xed1   :  { %v4351_v18 = vadd.f32 %v2812_v14, %v4272_v20  ;;  %v2965_v14 = vld [vmem:[#allocation4 + $0xb40] sm:$0xff]  ;;  %v3083_v9 = vld [vmem:[#allocation4 + $0xcf0] sm:$0xff] }
 0xed2   :  { %v2819_v53 = vsel %vm839_vm2, %v4348_v23, 0.0 }
 0xed3   :  { %2820 = vadd.xlane.f32.xlu1 %v2819_v53  ;;  %v2816_v41 = vsel %vm290_vm1, %v4351_v18, 0.0  ;;  %v3783_v53 = vpack.c.bf16 %v2965_v14, %v2964_v63 }
 0xed4   :  { %2817 = vadd.xlane.f32.xlu0 %v2816_v41  ;;  %v2966_v41 = vld [vmem:[#allocation4 + $0xb70] sm:$0xff] }
 0xf60   :  { %v2821_v40 = vpop.xlane.xlu1 %2820 }
 0xf61   :  { %v2823_v5 = vmul.f32 0.03125, %v2821_v40  ;;  %v2818_v31 = vpop.xlane.xlu0 %2817  ;;  %v2967_v40 = vld [vmem:[#allocation4 + $0xba0] sm:$0xff] }
 0xf62   :  { %v2822_v17 = vmul.f32 0.03125, %v2818_v31  ;;  %v2852_v31 = vld [vmem:[#allocation4 + $0x8a0] ss:$0 sm:$0xff] }
 0xf63   :  { %v2825_v38 = vsub.f32 %v4348_v23, %v2823_v5  ;;  %v3787_v5 = vpack.c.bf16 %v2967_v40, %v2966_v41 }
 0xf64   :  { %v2824_v24 = vsub.f32 %v4351_v18, %v2822_v17 }
 0xf65   :  { %v2827_v62 = vmul.f32 %v2825_v38, %v2825_v38 }
 0xf66   :  { %v2826_v0 = vmul.f32 %v2824_v24, %v2824_v24 }
 0xf67   :  { %v2831_v20 = vsel %vm839_vm2, %v2827_v62, 0.0 }
 0xf68   :  { %2832 = vadd.xlane.f32.xlu1 %v2831_v20  ;;  %v2828_v46 = vsel %vm290_vm1, %v2826_v0, 0.0 }
 0xf69   :  { %2829 = vadd.xlane.f32.xlu0 %v2828_v46 }
 0xff5   :  { %v2833_v15 = vpop.xlane.xlu1 %2832 }
 0xff6   :  { %v2835_v25 = vmul.f32 0.03125, %v2833_v15  ;;  %v2830_v10 = vpop.xlane.xlu0 %2829 }
 0xff7   :  { %v2834_v12 = vmul.f32 0.03125, %v2830_v10 }
 0xff8   :  { %v2837_v22 = vadd.f32 1e-06, %v2835_v25 }
 0xff9   :  { %v2836_v16 = vadd.f32 1e-06, %v2834_v12 }
 0xffa   :  { %3867 = vrsqrt.f32 %v2837_v22 }
 0xffb   :  { %3869 = vrsqrt.f32 %v2836_v16 }
0x1004   :  { %v3868_v28 = vpop.eup %3867 }
0x1005   :  { %v3870_v29 = vpop.eup %3869  ;;  %v2841_v37 = vmul.f32 %v3868_v28, %v2825_v38 }
0x1006   :  { %v2840_v45 = vmul.f32 %v3870_v29, %v2824_v24 }
0x1007   :  { %v2845_v55 = vmul.f32 %v2843_v47, %v2841_v37  ;;  %v250_v37 = vsub.s32 7, %v4091_v52 }
0x1008   :  { %v2844_v48 = vmul.f32 %v2842_v33, %v2840_v45  ;;  %v2968_v45 = vld [vmem:[#allocation4 + $0xbd0] ss:$0 sm:$0xff] }
0x1009   :  { %v2847_v30 = vadd.f32 %v2845_v55, %v4164_v6  ;;  %v2959_v6 = vld [vmem:[#allocation4 + $0xa20] sm:$0xff]  ;;  %v251_v33 = vrot.slane %v4096_v58, %v250_v37 }
0x100a   :  { %v2846_v56 = vadd.f32 %v2844_v48, %v4156_v57  ;;  %v2958_v57 = vld [vmem:[#allocation4 + $0x9f0] sm:$0xff] }
0x100b   :  { %v3771_v32 = vpack.c.bf16 %v2959_v6, %v2958_v57  ;;  %v603_v48 = vadd.f32 %v4139_v43, %v251_v33  ;;  %v597_v59 = vadd.f32 %v4128_v36, %v251_v33 }
0x100c   :  { %3494 = vmatprep.mubr.msk.f32.mxu1 %vm290_vm1, %v2846_v56 }
0x100d   :  { %3495 = vmatmul.mubr.msk.f32.vlgmr.msra.gmra.mrb[48].mxu1 %vm290_vm1, %v2847_v30  ;;  %3772 = vmatprep.subr.bf16.mxu0 %v3771_v32 }
0x100e   :  { %3774 = vmatpush3.bf16.msra.mxu0 %v3771_v32 }
0x100f   :  { %3776 = vmatprep.subr.bf16.mxu0 %v3775_v51 }
0x1012   :  { %3778 = vmatpush3.bf16.msra.mxu0 %v3775_v51  ;;  %v3082_v51 = vld [vmem:[#allocation4 + $0xcc0] sm:$0xff] }
0x1013   :  { %3780 = vmatprep.subr.bf16.mxu0 %v3779_v13 }
0x1016   :  { %3782 = vmatpush3.bf16.msra.mxu0 %v3779_v13  ;;  %v3795_v13 = vpack.c.bf16 %v3083_v9, %v3082_v51 }
0x1017   :  { %3784 = vmatprep.subr.bf16.mxu0 %v3783_v53 }
0x101a   :  { %3786 = vmatpush3.bf16.msra.mxu0 %v3783_v53 }
0x101b   :  { %3788 = vmatprep.subr.bf16.mxu0 %v3787_v5 }
0x101e   :  { %3790 = vmatpush3.bf16.msra.mxu0 %v3787_v5 }
0x10e0   :  { %v3496_v17 = vpop.f32.mrb[48].mxu1 }
0x10e1   :  { %v2931_v38 = vadd.f32 %v3496_v17, %v2852_v31  ;;  %v2925_v24 = vpop.f32.mrb[49].mxu1 }
0x10e2   :  { %v2926_v62 = vadd.f32 %v2925_v24, %v2852_v31 }
0x10e3   :  { %v2935_v0 = vmul.f32 %v2931_v38, %v2931_v38 }
0x10e4   :  { %v2934_v20 = vmul.f32 %v2926_v62, %v2926_v62 }
0x10e5   :  { %v2937_v46 = vmul.f32 %v2935_v0, %v2931_v38 }
0x10e6   :  { %v2936_v50 = vmul.f32 %v2934_v20, %v2926_v62 }
0x10e7   :  { %v2939_v35 = vmul.f32 0.044715, %v2937_v46 }
0x10e8   :  { %v2938_v21 = vmul.f32 0.044715, %v2936_v50 }
0x10e9   :  { %v2941_v26 = vadd.f32 %v2939_v35, %v2931_v38 }
0x10ea   :  { %v2940_v19 = vadd.f32 %v2938_v21, %v2926_v62  ;;  %v3084_v21 = vld [vmem:[#allocation4 + $0xd20] ss:$0 sm:$0xff] }
0x10eb   :  { %v2943_v27 = vmul.f32 0.7978846, %v2941_v26 }
0x10ec   :  { %v2942_v15 = vmul.f32 0.7978846, %v2940_v19 }
0x10ed   :  { %3871 = vtanh.f32 %v2943_v27 }
0x10ee   :  { %3873 = vtanh.f32 %v2942_v15 }
0x10f7   :  { %v3872_v25 = vpop.eup %3871 }
0x10f8   :  { %v3874_v10 = vpop.eup %3873  ;;  %v2947_v12 = vadd.f32 1.0, %v3872_v25 }
0x10f9   :  { %v2946_v22 = vadd.f32 1.0, %v3874_v10 }
0x10fa   :  { %v2949_v16 = vmul.f32 0.5, %v2947_v12 }
0x10fb   :  { %v2948_v28 = vmul.f32 0.5, %v2946_v22 }
0x10fc   :  { %v2951_v47 = vmul.f32 %v2949_v16, %v2931_v38  ;;  %v3075_v38 = vadd.f32 1.0, %v4166_v8 }
0x10fd   :  { %v2950_v29 = vmul.f32 %v2948_v28, %v2926_v62  ;;  %v3074_v62 = vadd.f32 1.0, %v4158_v60 }
0x10ff   :  { %3529 = vmatprep.mubr.f32.mxu0 %v2950_v29 }
0x1100   :  { %3530 = vmatmul.mubr.f32.vlgmr.msra.gmra.mrb[30].mxu0 %v2951_v47 }
0x11d3   :  { %v3531_v55 = vpop.f32.mrb[30].mxu0 }
0x11d4   :  { %v3041_v30 = vadd.f32 %v3531_v55, %v2968_v45  ;;  %v3035_v56 = vpop.f32.mrb[31].mxu0 }
0x11d5   :  { %v3036_v49 = vadd.f32 %v3035_v56, %v2968_v45 }
0x11d6   :  { %v3045_v39 = vmul.f32 %v3041_v30, %v603_v48 }
0x11d7   :  { %v3044_v54 = vmul.f32 %v3036_v49, %v597_v59 }
0x11d8   :  { %v3047_v1 = vadd.f32 %v3045_v39, %v4348_v23 }
0x11d9   :  { %v3046_v7 = vadd.f32 %v3044_v54, %v4351_v18  ;;  %v3080_v18 = vld [vmem:[#allocation4 + $0xc60] sm:$0xff] }
0x11da   :  { %v3051_v42 = vsel %vm839_vm2, %v3047_v1, 0.0  ;;  %v3791_v44 = vpack.c.bf16 %v3081_v4, %v3080_v18 }
0x11db   :  { %3052 = vadd.xlane.f32.xlu1 %v3051_v42  ;;  %v3048_v52 = vsel %vm290_vm1, %v3046_v7, 0.0 }
0x11dc   :  { %3049 = vadd.xlane.f32.xlu0 %v3048_v52  ;;  %3792 = vmatprep.subr.bf16.mxu1 %v3791_v44 }
0x11dd   :  { %3794 = vmatpush3.bf16.msra.mxu1 %v3791_v44 }
0x11de   :  { %3796 = vmatprep.subr.bf16.mxu1 %v3795_v13 }
0x11e1   :  { %3798 = vmatpush3.bf16.msra.mxu1 %v3795_v13 }
0x1268   :  { %v3053_v58 = vpop.xlane.xlu1 %3052 }
0x1269   :  { %v3055_v2 = vmul.f32 0.03125, %v3053_v58  ;;  %v3050_v43 = vpop.xlane.xlu0 %3049 }
0x126a   :  { %v3054_v34 = vmul.f32 0.03125, %v3050_v43 }
0x126b   :  { %v3057_v57 = vsub.f32 %v3047_v1, %v3055_v2 }
0x126c   :  { %v3056_v6 = vsub.f32 %v3046_v7, %v3054_v34 }
0x126d   :  { %v3059_v36 = vmul.f32 %v3057_v57, %v3057_v57 }
0x126e   :  { %v3058_v32 = vmul.f32 %v3056_v6, %v3056_v6 }
0x126f   :  { %v3063_v61 = vsel %vm839_vm2, %v3059_v36, 0.0 }
0x1270   :  { %3064 = vadd.xlane.f32.xlu1 %v3063_v61  ;;  %v3060_v23 = vsel %vm290_vm1, %v3058_v32, 0.0 }
0x1271   :  { %3061 = vadd.xlane.f32.xlu0 %v3060_v23 }
0x12fd   :  { %v3065_v63 = vpop.xlane.xlu1 %3064 }
0x12fe   :  { %v3067_v14 = vmul.f32 0.03125, %v3065_v63  ;;  %v3062_v53 = vpop.xlane.xlu0 %3061 }
0x12ff   :  { %v3066_v41 = vmul.f32 0.03125, %v3062_v53 }
0x1300   :  { %v3069_v40 = vadd.f32 1e-06, %v3067_v14 }
0x1301   :  { %v3068_v5 = vadd.f32 1e-06, %v3066_v41 }
0x1302   :  { %3875 = vrsqrt.f32 %v3069_v40 }
0x1303   :  { %3877 = vrsqrt.f32 %v3068_v5 }
0x130c   :  { %v3876_v31 = vpop.eup %3875 }
0x130d   :  { %v3878_v17 = vpop.eup %3877  ;;  %v3073_v24 = vmul.f32 %v3876_v31, %v3057_v57 }
0x130e   :  { %v3072_v0 = vmul.f32 %v3878_v17, %v3056_v6 }
0x130f   :  { %v3077_v20 = vmul.f32 %v3075_v38, %v3073_v24 }
0x1310   :  { %v3076_v46 = vmul.f32 %v3074_v62, %v3072_v0 }
0x1311   :  { %v3079_v50 = vadd.f32 %v3077_v20, %v4168_v11 }
0x1312   :  { %v3078_v35 = vadd.f32 %v3076_v46, %v4162_v3 }
0x1314   :  { %3540 = vmatprep.mubr.msk.f32.mxu1 %vm290_vm1, %v3078_v35 }
0x1315   :  { %3541 = vmatmul.mubr.msk.f32.vlgmr.msra.gmra.mrb[50].mxu1 %vm290_vm1, %v3079_v50 }
0x13e8   :  { %v3542_v26 = vpop.f32.mrb[50].mxu1 }
0x13e9   :  { %v3163_v19 = vadd.f32 %v3542_v26, %v3084_v21  ;;  %v3157_v27 = vpop.f32.mrb[51].mxu1 }
0x13ea   :  { %v3158_v15 = vadd.f32 %v3157_v27, %v3084_v21 }
0x13eb   :  { %3167 = vst [vmem:[%s4392_s3 + $0x8] sm:$0xf] %v3163_v19 }
0x13ec   :  { %3166 = vst [vmem:[%s4392_s3] sm:$0xff] %v3158_v15 }
0x13ed   :  { %3172 = vsyncpa [#allocation3], 1 }
0x13ee   :  { %3173 = vsyncpa [#allocation5], 1 }

</bundles_post_ra>
